<compile_context>
chip_gen: v7x
topology: tpu7x:2x2x1
jax: 0.10.0
libtpu: 0.0.40
codegen_flags: <defaults>
</compile_context>

<pallas_src>
import jax
import jax.numpy as jnp
from jax.experimental import pallas as pl
from jax.experimental.pallas import tpu as pltpu


def _make_lstm_kernel(L, T, I, H, O_pad):
    """Builds the Pallas kernel body for a given static configuration."""

    def kernel(*refs):
        # ---- unpack refs -------------------------------------------------
        x_ref = refs[0]                                   # (T, I)
        layer_refs = refs[1:1 + 3 * L]                    # per layer: w_ih, w_hh, b
        wlin_ref = refs[1 + 3 * L]                        # (H, O_pad)
        blin_ref = refs[2 + 3 * L]                        # (1, O_pad)
        pred_ref = refs[3 + 3 * L]                        # (T, O_pad)
        hn_ref = refs[4 + 3 * L]                          # (L, H)
        cn_ref = refs[5 + 3 * L]                          # (L, H)
        seq_scr = refs[6 + 3 * L]                         # VMEM scratch (T, H)

        # ---- stacked LSTM layers ------------------------------------------
        # TODO(synk): for large H/L, turn this Python layer loop into a grid axis
        # with a BlockSpec index_map over `l` so only one layer's weights are
        # VMEM-resident at a time (matters on v7x's 64 MiB VMEM).
        for l in range(L):
            w_ih = layer_refs[3 * l][...]                 # (I or H, 4H)
            w_hh = layer_refs[3 * l + 1][...]             # (H, 4H)
            b = layer_refs[3 * l + 2][...]                # (1, 4H)

            # Hoisted input projection: one well-shaped (T, 4H) matmul + bias,
            # kept as a live value (one vreg at these sizes) — off the
            # recurrent critical path, no scratch round trip.
            layer_in = x_ref[...] if l == 0 else seq_scr[...]
            gx = jnp.dot(layer_in, w_ih, preferred_element_type=jnp.float32) + b

            h = jnp.zeros((1, H), jnp.float32)
            c = jnp.zeros((1, H), jnp.float32)
            # T is static and small: a static Python loop fully unrolls, all
            # slices/stores use concrete indices, and the scheduler can overlap
            # MXU / EUP / VPU work across adjacent timesteps.
            for t in range(T):
                gates = (
                    jnp.dot(h, w_hh, preferred_element_type=jnp.float32)
                    + gx[t:t + 1, :]
                )                                          # (1, 4H)
                # Two whole-vector transcendentals, then static lane slices,
                # instead of four sub-vreg EUP pushes.
                sig = jax.nn.sigmoid(gates)
                tnh = jnp.tanh(gates)
                i_g = sig[:, 0 * H:1 * H]
                f_g = sig[:, 1 * H:2 * H]
                g_g = tnh[:, 2 * H:3 * H]
                o_g = sig[:, 3 * H:4 * H]
                c = f_g * c + i_g * g_g
                h = o_g * jnp.tanh(c)
                # overwrite this row with the current layer's output (static slice)
                seq_scr[t:t + 1, :] = h

            hn_ref[l:l + 1, :] = h
            cn_ref[l:l + 1, :] = c

        # ---- final Linear head on the whole output sequence --------------
        # Output is lane-dense (O padded to a multiple of 128) -> unmasked stores.
        pred_ref[...] = (
            jnp.dot(seq_scr[...], wlin_ref[...], preferred_element_type=jnp.float32)
            + blin_ref[...]
        )

    return kernel


def lstm_model_forward(seq, params, *, hidden_size, out_size, layers):
    """Pallas wrapper mirroring LSTMmodel.forward(seq) for unbatched seq (T, I)."""
    T, I = seq.shape
    H, O, L = hidden_size, out_size, layers
    O_pad = max(128, ((O + 127) // 128) * 128)   # lane-dense output width

    # Pad the linear head to a lane-dense width; extra columns are zero and
    # sliced off in the wrapper.
    w_lin_p = jnp.zeros((H, O_pad), jnp.float32).at[:, :O].set(params["w_lin"])
    b_lin_p = jnp.zeros((1, O_pad), jnp.float32).at[:, :O].set(params["b_lin"])

    flat_inputs = [seq]
    for l in range(L):
        flat_inputs += [params[f"w_ih_{l}"], params[f"w_hh_{l}"], params[f"b_{l}"]]
    flat_inputs += [w_lin_p, b_lin_p]

    def full_spec(arr):
        return pl.BlockSpec(arr.shape, lambda: (0,) * arr.ndim)

    in_specs = [full_spec(a) for a in flat_inputs]

    out_shape = (
        jax.ShapeDtypeStruct((T, O_pad), jnp.float32),   # pred (padded lanes)
        jax.ShapeDtypeStruct((L, H), jnp.float32),       # h_n
        jax.ShapeDtypeStruct((L, H), jnp.float32),       # c_n
    )
    out_specs = (
        pl.BlockSpec((T, O_pad), lambda: (0, 0)),
        pl.BlockSpec((L, H), lambda: (0, 0)),
        pl.BlockSpec((L, H), lambda: (0, 0)),
    )

    kernel = _make_lstm_kernel(L, T, I, H, O_pad)

    pred_p, h_n, c_n = pl.pallas_call(
        kernel,
        out_shape=out_shape,
        in_specs=in_specs,
        out_specs=out_specs,
        scratch_shapes=[
            pltpu.VMEM((T, H), jnp.float32),      # layer output sequence
        ],
        # Default scoped-VMEM limit is ample at these shapes; for larger T/H set
        # pltpu.CompilerParams(vmem_limit_bytes=...) and tile over time / layers.
    )(*flat_inputs)
    pred = pred_p[:, :O]
    return pred, (h_n, c_n)


def init_params(key, input_size, hidden_size, out_size, layers):
    """Deterministic synthetic params, PyTorch-style uniform(-1/sqrt(H), 1/sqrt(H))."""
    H, I, O, L = hidden_size, input_size, out_size, layers
    bound = 1.0 / jnp.sqrt(jnp.float32(H))
    params = {}
    keys = jax.random.split(key, 4 * L + 2)
    k = 0
    for l in range(L):
        in_l = I if l == 0 else H
        params[f"w_ih_{l}"] = jax.random.uniform(
            keys[k], (in_l, 4 * H), jnp.float32, -bound, bound); k += 1
        params[f"w_hh_{l}"] = jax.random.uniform(
            keys[k], (H, 4 * H), jnp.float32, -bound, bound); k += 1
        b_ih = jax.random.uniform(keys[k], (1, 4 * H), jnp.float32, -bound, bound); k += 1
        b_hh = jax.random.uniform(keys[k], (1, 4 * H), jnp.float32, -bound, bound); k += 1
        params[f"b_{l}"] = b_ih + b_hh            # PyTorch adds both biases
    params["w_lin"] = jax.random.uniform(
        keys[k], (H, O), jnp.float32, -bound, bound); k += 1
    params["b_lin"] = jax.random.uniform(
        keys[k], (1, O), jnp.float32, -bound, bound); k += 1
    return params


def _reference_forward(seq, params, *, hidden_size, out_size, layers):
    """Pure-JAX reference for a numerical sanity check."""
    H, L = hidden_size, layers
    T = seq.shape[0]
    x = seq
    h_n, c_n = [], []
    for l in range(L):
        w_ih, w_hh, b = params[f"w_ih_{l}"], params[f"w_hh_{l}"], params[f"b_{l}"]
        h = jnp.zeros((1, H), jnp.float32)
        c = jnp.zeros((1, H), jnp.float32)
        outs = []
        for t in range(T):
            gates = x[t:t + 1] @ w_ih + h @ w_hh + b
            i_g = jax.nn.sigmoid(gates[:, 0 * H:1 * H])
            f_g = jax.nn.sigmoid(gates[:, 1 * H:2 * H])
            g_g = jnp.tanh(gates[:, 2 * H:3 * H])
            o_g = jax.nn.sigmoid(gates[:, 3 * H:4 * H])
            c = f_g * c + i_g * g_g
            h = o_g * jnp.tanh(c)
            outs.append(h)
        x = jnp.concatenate(outs, axis=0)
        h_n.append(h)
        c_n.append(c)
    pred = x @ params["w_lin"] + params["b_lin"]
    return pred, (jnp.concatenate(h_n, 0), jnp.concatenate(c_n, 0))


if __name__ == "__main__":
    # Small shapes consistent with the module: unbatched sequence (seq_len, input_size)
    SEQ_LEN, INPUT_SIZE, HIDDEN_SIZE, OUT_SIZE, LAYERS = 8, 16, 32, 4, 2

    key = jax.random.PRNGKey(0)
    k_params, k_data = jax.random.split(key)
    params = init_params(k_params, INPUT_SIZE, HIDDEN_SIZE, OUT_SIZE, LAYERS)
    seq = jax.random.normal(k_data, (SEQ_LEN, INPUT_SIZE), jnp.float32)

    pred, (h_n, c_n) = lstm_model_forward(
        seq, params, hidden_size=HIDDEN_SIZE, out_size=OUT_SIZE, layers=LAYERS)
    jax.block_until_ready((pred, h_n, c_n))

    # Sanity check against a pure-JAX reference.
    pred_ref, (h_ref, c_ref) = _reference_forward(
        seq, params, hidden_size=HIDDEN_SIZE, out_size=OUT_SIZE, layers=LAYERS)
    assert jnp.allclose(pred, pred_ref, atol=5e-3, rtol=5e-3)
    assert jnp.allclose(h_n, h_ref, atol=5e-3, rtol=5e-3)
    assert jnp.allclose(c_n, c_ref, atol=5e-3, rtol=5e-3)

    print("KERNEL_OK")
</pallas_src>

<mosaic_0001>
module attributes {stable_mosaic.version = 11 : i64} {
  func.func @kernel(%arg0: memref<8x16xf32, #tpu.memory_space<vmem>>, %arg1: memref<16x128xf32, #tpu.memory_space<vmem>>, %arg2: memref<32x128xf32, #tpu.memory_space<vmem>>, %arg3: memref<1x128xf32, #tpu.memory_space<vmem>>, %arg4: memref<32x128xf32, #tpu.memory_space<vmem>>, %arg5: memref<32x128xf32, #tpu.memory_space<vmem>>, %arg6: memref<1x128xf32, #tpu.memory_space<vmem>>, %arg7: memref<32x128xf32, #tpu.memory_space<vmem>>, %arg8: memref<1x128xf32, #tpu.memory_space<vmem>>, %arg9: memref<8x128xf32, #tpu.memory_space<vmem>>, %arg10: memref<2x32xf32, #tpu.memory_space<vmem>>, %arg11: memref<2x32xf32, #tpu.memory_space<vmem>>, %arg12: memref<8x32xf32, #tpu.memory_space<vmem>>) attributes {dimension_semantics = [], scalar_prefetch = 0 : i64, scratch_operands = 1 : i64, tpu.core_type = #tpu.core_type<tc>} {
    %c0 = arith.constant 0 : index
    %c0_0 = arith.constant 0 : index
    %0 = vector.load %arg1[%c0, %c0_0] : memref<16x128xf32, #tpu.memory_space<vmem>>, vector<16x128xf32>
    %c0_1 = arith.constant 0 : index
    %c0_2 = arith.constant 0 : index
    %1 = vector.load %arg2[%c0_1, %c0_2] : memref<32x128xf32, #tpu.memory_space<vmem>>, vector<32x128xf32>
    %c0_3 = arith.constant 0 : index
    %c0_4 = arith.constant 0 : index
    %2 = vector.load %arg3[%c0_3, %c0_4] : memref<1x128xf32, #tpu.memory_space<vmem>>, vector<1x128xf32>
    %c0_5 = arith.constant 0 : index
    %c0_6 = arith.constant 0 : index
    %3 = vector.load %arg0[%c0_5, %c0_6] : memref<8x16xf32, #tpu.memory_space<vmem>>, vector<8x16xf32>
    %cst = arith.constant dense<0.000000e+00> : vector<8x128xf32>
    %4 = tpu.matmul %3, %0, %cst {dimension_numbers = #tpu.dot_dimension_numbers<[1], [0], [0], [1], [0, 0, 1, 1], [], []>} : vector<8x16xf32>, vector<16x128xf32>, vector<8x128xf32> -> vector<8x128xf32>
    %5 = vector.broadcast %2 : vector<1x128xf32> to vector<8x128xf32>
    %6 = arith.addf %4, %5 : vector<8x128xf32>
    %cst_7 = arith.constant 0.000000e+00 : f32
    %7 = vector.broadcast %cst_7 : f32 to vector<1x32xf32>
    %cst_8 = arith.constant 0.000000e+00 : f32
    %8 = vector.broadcast %cst_8 : f32 to vector<1x32xf32>
    %cst_9 = arith.constant dense<0.000000e+00> : vector<1x128xf32>
    %9 = tpu.matmul %7, %1, %cst_9 {dimension_numbers = #tpu.dot_dimension_numbers<[1], [0], [0], [1], [0, 0, 1, 1], [], []>} : vector<1x32xf32>, vector<32x128xf32>, vector<1x128xf32> -> vector<1x128xf32>
    %10 = vector.extract_strided_slice %6 {offsets = [0, 0], sizes = [1, 128], strides = [1, 1]} : vector<8x128xf32> to vector<1x128xf32>
    %11 = arith.addf %9, %10 : vector<1x128xf32>
    %12 = arith.negf %11 : vector<1x128xf32>
    %13 = math.exp %12 : vector<1x128xf32>
    %cst_10 = arith.constant 1.000000e+00 : f32
    %14 = vector.broadcast %cst_10 : f32 to vector<1x128xf32>
    %15 = arith.addf %14, %13 : vector<1x128xf32>
    %16 = arith.divf %14, %15 : vector<1x128xf32>
    %17 = math.tanh %11 : vector<1x128xf32>
    %18 = vector.extract_strided_slice %16 {offsets = [0, 0], sizes = [1, 32], strides = [1, 1]} : vector<1x128xf32> to vector<1x32xf32>
    %19 = vector.extract_strided_slice %16 {offsets = [0, 32], sizes = [1, 32], strides = [1, 1]} : vector<1x128xf32> to vector<1x32xf32>
    %20 = vector.extract_strided_slice %17 {offsets = [0, 64], sizes = [1, 32], strides = [1, 1]} : vector<1x128xf32> to vector<1x32xf32>
    %21 = vector.extract_strided_slice %16 {offsets = [0, 96], sizes = [1, 32], strides = [1, 1]} : vector<1x128xf32> to vector<1x32xf32>
    %22 = arith.mulf %19, %8 : vector<1x32xf32>
    %23 = arith.mulf %18, %20 : vector<1x32xf32>
    %24 = arith.addf %22, %23 : vector<1x32xf32>
    %25 = math.tanh %24 : vector<1x32xf32>
    %26 = arith.mulf %21, %25 : vector<1x32xf32>
    %c0_11 = arith.constant 0 : index
    %c0_12 = arith.constant 0 : index
    %27 = vector.load %arg12[%c0_11, %c0_12] : memref<8x32xf32, #tpu.memory_space<vmem>>, vector<1x32xf32>
    tpu.vector_store %arg12[%c0_11, %c0_12], %26 {strides = array<i32>} : memref<8x32xf32, #tpu.memory_space<vmem>>, vector<1x32xf32>,
    %cst_13 = arith.constant dense<0.000000e+00> : vector<1x128xf32>
    %28 = tpu.matmul %26, %1, %cst_13 {dimension_numbers = #tpu.dot_dimension_numbers<[1], [0], [0], [1], [0, 0, 1, 1], [], []>} : vector<1x32xf32>, vector<32x128xf32>, vector<1x128xf32> -> vector<1x128xf32>
    %29 = vector.extract_strided_slice %6 {offsets = [1, 0], sizes = [1, 128], strides = [1, 1]} : vector<8x128xf32> to vector<1x128xf32>
    %30 = arith.addf %28, %29 : vector<1x128xf32>
    %31 = arith.negf %30 : vector<1x128xf32>
    %32 = math.exp %31 : vector<1x128xf32>
    %cst_14 = arith.constant 1.000000e+00 : f32
    %33 = vector.broadcast %cst_14 : f32 to vector<1x128xf32>
    %34 = arith.addf %33, %32 : vector<1x128xf32>
    %35 = arith.divf %33, %34 : vector<1x128xf32>
    %36 = math.tanh %30 : vector<1x128xf32>
    %37 = vector.extract_strided_slice %35 {offsets = [0, 0], sizes = [1, 32], strides = [1, 1]} : vector<1x128xf32> to vector<1x32xf32>
    %38 = vector.extract_strided_slice %35 {offsets = [0, 32], sizes = [1, 32], strides = [1, 1]} : vector<1x128xf32> to vector<1x32xf32>
    %39 = vector.extract_strided_slice %36 {offsets = [0, 64], sizes = [1, 32], strides = [1, 1]} : vector<1x128xf32> to vector<1x32xf32>
    %40 = vector.extract_strided_slice %35 {offsets = [0, 96], sizes = [1, 32], strides = [1, 1]} : vector<1x128xf32> to vector<1x32xf32>
    %41 = arith.mulf %38, %24 : vector<1x32xf32>
    %42 = arith.mulf %37, %39 : vector<1x32xf32>
    %43 = arith.addf %41, %42 : vector<1x32xf32>
    %44 = math.tanh %43 : vector<1x32xf32>
    %45 = arith.mulf %40, %44 : vector<1x32xf32>
    %c1 = arith.constant 1 : index
    %c0_15 = arith.constant 0 : index
    %46 = vector.load %arg12[%c1, %c0_15] : memref<8x32xf32, #tpu.memory_space<vmem>>, vector<1x32xf32>
    tpu.vector_store %arg12[%c1, %c0_15], %45 {strides = array<i32>} : memref<8x32xf32, #tpu.memory_space<vmem>>, vector<1x32xf32>,
    %cst_16 = arith.constant dense<0.000000e+00> : vector<1x128xf32>
    %47 = tpu.matmul %45, %1, %cst_16 {dimension_numbers = #tpu.dot_dimension_numbers<[1], [0], [0], [1], [0, 0, 1, 1], [], []>} : vector<1x32xf32>, vector<32x128xf32>, vector<1x128xf32> -> vector<1x128xf32>
    %48 = vector.extract_strided_slice %6 {offsets = [2, 0], sizes = [1, 128], strides = [1, 1]} : vector<8x128xf32> to vector<1x128xf32>
    %49 = arith.addf %47, %48 : vector<1x128xf32>
    %50 = arith.negf %49 : vector<1x128xf32>
    %51 = math.exp %50 : vector<1x128xf32>
    %cst_17 = arith.constant 1.000000e+00 : f32
    %52 = vector.broadcast %cst_17 : f32 to vector<1x128xf32>
    %53 = arith.addf %52, %51 : vector<1x128xf32>
    %54 = arith.divf %52, %53 : vector<1x128xf32>
    %55 = math.tanh %49 : vector<1x128xf32>
    %56 = vector.extract_strided_slice %54 {offsets = [0, 0], sizes = [1, 32], strides = [1, 1]} : vector<1x128xf32> to vector<1x32xf32>
    %57 = vector.extract_strided_slice %54 {offsets = [0, 32], sizes = [1, 32], strides = [1, 1]} : vector<1x128xf32> to vector<1x32xf32>
    %58 = vector.extract_strided_slice %55 {offsets = [0, 64], sizes = [1, 32], strides = [1, 1]} : vector<1x128xf32> to vector<1x32xf32>
    %59 = vector.extract_strided_slice %54 {offsets = [0, 96], sizes = [1, 32], strides = [1, 1]} : vector<1x128xf32> to vector<1x32xf32>
    %60 = arith.mulf %57, %43 : vector<1x32xf32>
    %61 = arith.mulf %56, %58 : vector<1x32xf32>
    %62 = arith.addf %60, %61 : vector<1x32xf32>
    %63 = math.tanh %62 : vector<1x32xf32>
    %64 = arith.mulf %59, %63 : vector<1x32xf32>
    %c2 = arith.constant 2 : index
    %c0_18 = arith.constant 0 : index
    %65 = vector.load %arg12[%c2, %c0_18] : memref<8x32xf32, #tpu.memory_space<vmem>>, vector<1x32xf32>
    tpu.vector_store %arg12[%c2, %c0_18], %64 {strides = array<i32>} : memref<8x32xf32, #tpu.memory_space<vmem>>, vector<1x32xf32>,
    %cst_19 = arith.constant dense<0.000000e+00> : vector<1x128xf32>
    %66 = tpu.matmul %64, %1, %cst_19 {dimension_numbers = #tpu.dot_dimension_numbers<[1], [0], [0], [1], [0, 0, 1, 1], [], []>} : vector<1x32xf32>, vector<32x128xf32>, vector<1x128xf32> -> vector<1x128xf32>
    %67 = vector.extract_strided_slice %6 {offsets = [3, 0], sizes = [1, 128], strides = [1, 1]} : vector<8x128xf32> to vector<1x128xf32>
    %68 = arith.addf %66, %67 : vector<1x128xf32>
    %69 = arith.negf %68 : vector<1x128xf32>
    %70 = math.exp %69 : vector<1x128xf32>
    %cst_20 = arith.constant 1.000000e+00 : f32
    %71 = vector.broadcast %cst_20 : f32 to vector<1x128xf32>
    %72 = arith.addf %71, %70 : vector<1x128xf32>
    %73 = arith.divf %71, %72 : vector<1x128xf32>
    %74 = math.tanh %68 : vector<1x128xf32>
    %75 = vector.extract_strided_slice %73 {offsets = [0, 0], sizes = [1, 32], strides = [1, 1]} : vector<1x128xf32> to vector<1x32xf32>
    %76 = vector.extract_strided_slice %73 {offsets = [0, 32], sizes = [1, 32], strides = [1, 1]} : vector<1x128xf32> to vector<1x32xf32>
    %77 = vector.extract_strided_slice %74 {offsets = [0, 64], sizes = [1, 32], strides = [1, 1]} : vector<1x128xf32> to vector<1x32xf32>
    %78 = vector.extract_strided_slice %73 {offsets = [0, 96], sizes = [1, 32], strides = [1, 1]} : vector<1x128xf32> to vector<1x32xf32>
    %79 = arith.mulf %76, %62 : vector<1x32xf32>
    %80 = arith.mulf %75, %77 : vector<1x32xf32>
    %81 = arith.addf %79, %80 : vector<1x32xf32>
    %82 = math.tanh %81 : vector<1x32xf32>
    %83 = arith.mulf %78, %82 : vector<1x32xf32>
    %c3 = arith.constant 3 : index
    %c0_21 = arith.constant 0 : index
    %84 = vector.load %arg12[%c3, %c0_21] : memref<8x32xf32, #tpu.memory_space<vmem>>, vector<1x32xf32>
    tpu.vector_store %arg12[%c3, %c0_21], %83 {strides = array<i32>} : memref<8x32xf32, #tpu.memory_space<vmem>>, vector<1x32xf32>,
    %cst_22 = arith.constant dense<0.000000e+00> : vector<1x128xf32>
    %85 = tpu.matmul %83, %1, %cst_22 {dimension_numbers = #tpu.dot_dimension_numbers<[1], [0], [0], [1], [0, 0, 1, 1], [], []>} : vector<1x32xf32>, vector<32x128xf32>, vector<1x128xf32> -> vector<1x128xf32>
    %86 = vector.extract_strided_slice %6 {offsets = [4, 0], sizes = [1, 128], strides = [1, 1]} : vector<8x128xf32> to vector<1x128xf32>
    %87 = arith.addf %85, %86 : vector<1x128xf32>
    %88 = arith.negf %87 : vector<1x128xf32>
    %89 = math.exp %88 : vector<1x128xf32>
    %cst_23 = arith.constant 1.000000e+00 : f32
    %90 = vector.broadcast %cst_23 : f32 to vector<1x128xf32>
    %91 = arith.addf %90, %89 : vector<1x128xf32>
    %92 = arith.divf %90, %91 : vector<1x128xf32>
    %93 = math.tanh %87 : vector<1x128xf32>
    %94 = vector.extract_strided_slice %92 {offsets = [0, 0], sizes = [1, 32], strides = [1, 1]} : vector<1x128xf32> to vector<1x32xf32>
    %95 = vector.extract_strided_slice %92 {offsets = [0, 32], sizes = [1, 32], strides = [1, 1]} : vector<1x128xf32> to vector<1x32xf32>
    %96 = vector.extract_strided_slice %93 {offsets = [0, 64], sizes = [1, 32], strides = [1, 1]} : vector<1x128xf32> to vector<1x32xf32>
    %97 = vector.extract_strided_slice %92 {offsets = [0, 96], sizes = [1, 32], strides = [1, 1]} : vector<1x128xf32> to vector<1x32xf32>
    %98 = arith.mulf %95, %81 : vector<1x32xf32>
    %99 = arith.mulf %94, %96 : vector<1x32xf32>
    %100 = arith.addf %98, %99 : vector<1x32xf32>
    %101 = math.tanh %100 : vector<1x32xf32>
    %102 = arith.mulf %97, %101 : vector<1x32xf32>
    %c4 = arith.constant 4 : index
    %c0_24 = arith.constant 0 : index
    %103 = vector.load %arg12[%c4, %c0_24] : memref<8x32xf32, #tpu.memory_space<vmem>>, vector<1x32xf32>
    tpu.vector_store %arg12[%c4, %c0_24], %102 {strides = array<i32>} : memref<8x32xf32, #tpu.memory_space<vmem>>, vector<1x32xf32>,
    %cst_25 = arith.constant dense<0.000000e+00> : vector<1x128xf32>
    %104 = tpu.matmul %102, %1, %cst_25 {dimension_numbers = #tpu.dot_dimension_numbers<[1], [0], [0], [1], [0, 0, 1, 1], [], []>} : vector<1x32xf32>, vector<32x128xf32>, vector<1x128xf32> -> vector<1x128xf32>
    %105 = vector.extract_strided_slice %6 {offsets = [5, 0], sizes = [1, 128], strides = [1, 1]} : vector<8x128xf32> to vector<1x128xf32>
    %106 = arith.addf %104, %105 : vector<1x128xf32>
    %107 = arith.negf %106 : vector<1x128xf32>
    %108 = math.exp %107 : vector<1x128xf32>
    %cst_26 = arith.constant 1.000000e+00 : f32
    %109 = vector.broadcast %cst_26 : f32 to vector<1x128xf32>
    %110 = arith.addf %109, %108 : vector<1x128xf32>
    %111 = arith.divf %109, %110 : vector<1x128xf32>
    %112 = math.tanh %106 : vector<1x128xf32>
    %113 = vector.extract_strided_slice %111 {offsets = [0, 0], sizes = [1, 32], strides = [1, 1]} : vector<1x128xf32> to vector<1x32xf32>
    %114 = vector.extract_strided_slice %111 {offsets = [0, 32], sizes = [1, 32], strides = [1, 1]} : vector<1x128xf32> to vector<1x32xf32>
    %115 = vector.extract_strided_slice %112 {offsets = [0, 64], sizes = [1, 32], strides = [1, 1]} : vector<1x128xf32> to vector<1x32xf32>
    %116 = vector.extract_strided_slice %111 {offsets = [0, 96], sizes = [1, 32], strides = [1, 1]} : vector<1x128xf32> to vector<1x32xf32>
    %117 = arith.mulf %114, %100 : vector<1x32xf32>
    %118 = arith.mulf %113, %115 : vector<1x32xf32>
    %119 = arith.addf %117, %118 : vector<1x32xf32>
    %120 = math.tanh %119 : vector<1x32xf32>
    %121 = arith.mulf %116, %120 : vector<1x32xf32>
    %c5 = arith.constant 5 : index
    %c0_27 = arith.constant 0 : index
    %122 = vector.load %arg12[%c5, %c0_27] : memref<8x32xf32, #tpu.memory_space<vmem>>, vector<1x32xf32>
    tpu.vector_store %arg12[%c5, %c0_27], %121 {strides = array<i32>} : memref<8x32xf32, #tpu.memory_space<vmem>>, vector<1x32xf32>,
    %cst_28 = arith.constant dense<0.000000e+00> : vector<1x128xf32>
    %123 = tpu.matmul %121, %1, %cst_28 {dimension_numbers = #tpu.dot_dimension_numbers<[1], [0], [0], [1], [0, 0, 1, 1], [], []>} : vector<1x32xf32>, vector<32x128xf32>, vector<1x128xf32> -> vector<1x128xf32>
    %124 = vector.extract_strided_slice %6 {offsets = [6, 0], sizes = [1, 128], strides = [1, 1]} : vector<8x128xf32> to vector<1x128xf32>
    %125 = arith.addf %123, %124 : vector<1x128xf32>
    %126 = arith.negf %125 : vector<1x128xf32>
    %127 = math.exp %126 : vector<1x128xf32>
    %cst_29 = arith.constant 1.000000e+00 : f32
    %128 = vector.broadcast %cst_29 : f32 to vector<1x128xf32>
    %129 = arith.addf %128, %127 : vector<1x128xf32>
    %130 = arith.divf %128, %129 : vector<1x128xf32>
    %131 = math.tanh %125 : vector<1x128xf32>
    %132 = vector.extract_strided_slice %130 {offsets = [0, 0], sizes = [1, 32], strides = [1, 1]} : vector<1x128xf32> to vector<1x32xf32>
    %133 = vector.extract_strided_slice %130 {offsets = [0, 32], sizes = [1, 32], strides = [1, 1]} : vector<1x128xf32> to vector<1x32xf32>
    %134 = vector.extract_strided_slice %131 {offsets = [0, 64], sizes = [1, 32], strides = [1, 1]} : vector<1x128xf32> to vector<1x32xf32>
    %135 = vector.extract_strided_slice %130 {offsets = [0, 96], sizes = [1, 32], strides = [1, 1]} : vector<1x128xf32> to vector<1x32xf32>
    %136 = arith.mulf %133, %119 : vector<1x32xf32>
    %137 = arith.mulf %132, %134 : vector<1x32xf32>
    %138 = arith.addf %136, %137 : vector<1x32xf32>
    %139 = math.tanh %138 : vector<1x32xf32>
    %140 = arith.mulf %135, %139 : vector<1x32xf32>
    %c6 = arith.constant 6 : index
    %c0_30 = arith.constant 0 : index
    %141 = vector.load %arg12[%c6, %c0_30] : memref<8x32xf32, #tpu.memory_space<vmem>>, vector<1x32xf32>
    tpu.vector_store %arg12[%c6, %c0_30], %140 {strides = array<i32>} : memref<8x32xf32, #tpu.memory_space<vmem>>, vector<1x32xf32>,
    %cst_31 = arith.constant dense<0.000000e+00> : vector<1x128xf32>
    %142 = tpu.matmul %140, %1, %cst_31 {dimension_numbers = #tpu.dot_dimension_numbers<[1], [0], [0], [1], [0, 0, 1, 1], [], []>} : vector<1x32xf32>, vector<32x128xf32>, vector<1x128xf32> -> vector<1x128xf32>
    %143 = vector.extract_strided_slice %6 {offsets = [7, 0], sizes = [1, 128], strides = [1, 1]} : vector<8x128xf32> to vector<1x128xf32>
    %144 = arith.addf %142, %143 : vector<1x128xf32>
    %145 = arith.negf %144 : vector<1x128xf32>
    %146 = math.exp %145 : vector<1x128xf32>
    %cst_32 = arith.constant 1.000000e+00 : f32
    %147 = vector.broadcast %cst_32 : f32 to vector<1x128xf32>
    %148 = arith.addf %147, %146 : vector<1x128xf32>
    %149 = arith.divf %147, %148 : vector<1x128xf32>
    %150 = math.tanh %144 : vector<1x128xf32>
    %151 = vector.extract_strided_slice %149 {offsets = [0, 0], sizes = [1, 32], strides = [1, 1]} : vector<1x128xf32> to vector<1x32xf32>
    %152 = vector.extract_strided_slice %149 {offsets = [0, 32], sizes = [1, 32], strides = [1, 1]} : vector<1x128xf32> to vector<1x32xf32>
    %153 = vector.extract_strided_slice %150 {offsets = [0, 64], sizes = [1, 32], strides = [1, 1]} : vector<1x128xf32> to vector<1x32xf32>
    %154 = vector.extract_strided_slice %149 {offsets = [0, 96], sizes = [1, 32], strides = [1, 1]} : vector<1x128xf32> to vector<1x32xf32>
    %155 = arith.mulf %152, %138 : vector<1x32xf32>
    %156 = arith.mulf %151, %153 : vector<1x32xf32>
    %157 = arith.addf %155, %156 : vector<1x32xf32>
    %158 = math.tanh %157 : vector<1x32xf32>
    %159 = arith.mulf %154, %158 : vector<1x32xf32>
    %c7 = arith.constant 7 : index
    %c0_33 = arith.constant 0 : index
    %160 = vector.load %arg12[%c7, %c0_33] : memref<8x32xf32, #tpu.memory_space<vmem>>, vector<1x32xf32>
    tpu.vector_store %arg12[%c7, %c0_33], %159 {strides = array<i32>} : memref<8x32xf32, #tpu.memory_space<vmem>>, vector<1x32xf32>,
    %c0_34 = arith.constant 0 : index
    %c0_35 = arith.constant 0 : index
    %161 = vector.load %arg10[%c0_34, %c0_35] : memref<2x32xf32, #tpu.memory_space<vmem>>, vector<1x32xf32>
    tpu.vector_store %arg10[%c0_34, %c0_35], %159 {strides = array<i32>} : memref<2x32xf32, #tpu.memory_space<vmem>>, vector<1x32xf32>,
    %c0_36 = arith.constant 0 : index
    %c0_37 = arith.constant 0 : index
    %162 = vector.load %arg11[%c0_36, %c0_37] : memref<2x32xf32, #tpu.memory_space<vmem>>, vector<1x32xf32>
    tpu.vector_store %arg11[%c0_36, %c0_37], %157 {strides = array<i32>} : memref<2x32xf32, #tpu.memory_space<vmem>>, vector<1x32xf32>,
    %c0_38 = arith.constant 0 : index
    %c0_39 = arith.constant 0 : index
    %163 = vector.load %arg4[%c0_38, %c0_39] : memref<32x128xf32, #tpu.memory_space<vmem>>, vector<32x128xf32>
    %c0_40 = arith.constant 0 : index
    %c0_41 = arith.constant 0 : index
    %164 = vector.load %arg5[%c0_40, %c0_41] : memref<32x128xf32, #tpu.memory_space<vmem>>, vector<32x128xf32>
    %c0_42 = arith.constant 0 : index
    %c0_43 = arith.constant 0 : index
    %165 = vector.load %arg6[%c0_42, %c0_43] : memref<1x128xf32, #tpu.memory_space<vmem>>, vector<1x128xf32>
    %c0_44 = arith.constant 0 : index
    %c0_45 = arith.constant 0 : index
    %166 = vector.load %arg12[%c0_44, %c0_45] : memref<8x32xf32, #tpu.memory_space<vmem>>, vector<8x32xf32>
    %cst_46 = arith.constant dense<0.000000e+00> : vector<8x128xf32>
    %167 = tpu.matmul %166, %163, %cst_46 {dimension_numbers = #tpu.dot_dimension_numbers<[1], [0], [0], [1], [0, 0, 1, 1], [], []>} : vector<8x32xf32>, vector<32x128xf32>, vector<8x128xf32> -> vector<8x128xf32>
    %168 = vector.broadcast %165 : vector<1x128xf32> to vector<8x128xf32>
    %169 = arith.addf %167, %168 : vector<8x128xf32>
    %cst_47 = arith.constant 0.000000e+00 : f32
    %170 = vector.broadcast %cst_47 : f32 to vector<1x32xf32>
    %cst_48 = arith.constant 0.000000e+00 : f32
    %171 = vector.broadcast %cst_48 : f32 to vector<1x32xf32>
    %cst_49 = arith.constant dense<0.000000e+00> : vector<1x128xf32>
    %172 = tpu.matmul %170, %164, %cst_49 {dimension_numbers = #tpu.dot_dimension_numbers<[1], [0], [0], [1], [0, 0, 1, 1], [], []>} : vector<1x32xf32>, vector<32x128xf32>, vector<1x128xf32> -> vector<1x128xf32>
    %173 = vector.extract_strided_slice %169 {offsets = [0, 0], sizes = [1, 128], strides = [1, 1]} : vector<8x128xf32> to vector<1x128xf32>
    %174 = arith.addf %172, %173 : vector<1x128xf32>
    %175 = arith.negf %174 : vector<1x128xf32>
    %176 = math.exp %175 : vector<1x128xf32>
    %cst_50 = arith.constant 1.000000e+00 : f32
    %177 = vector.broadcast %cst_50 : f32 to vector<1x128xf32>
    %178 = arith.addf %177, %176 : vector<1x128xf32>
    %179 = arith.divf %177, %178 : vector<1x128xf32>
    %180 = math.tanh %174 : vector<1x128xf32>
    %181 = vector.extract_strided_slice %179 {offsets = [0, 0], sizes = [1, 32], strides = [1, 1]} : vector<1x128xf32> to vector<1x32xf32>
    %182 = vector.extract_strided_slice %179 {offsets = [0, 32], sizes = [1, 32], strides = [1, 1]} : vector<1x128xf32> to vector<1x32xf32>
    %183 = vector.extract_strided_slice %180 {offsets = [0, 64], sizes = [1, 32], strides = [1, 1]} : vector<1x128xf32> to vector<1x32xf32>
    %184 = vector.extract_strided_slice %179 {offsets = [0, 96], sizes = [1, 32], strides = [1, 1]} : vector<1x128xf32> to vector<1x32xf32>
    %185 = arith.mulf %182, %171 : vector<1x32xf32>
    %186 = arith.mulf %181, %183 : vector<1x32xf32>
    %187 = arith.addf %185, %186 : vector<1x32xf32>
    %188 = math.tanh %187 : vector<1x32xf32>
    %189 = arith.mulf %184, %188 : vector<1x32xf32>
    %c0_51 = arith.constant 0 : index
    %c0_52 = arith.constant 0 : index
    %190 = vector.load %arg12[%c0_51, %c0_52] : memref<8x32xf32, #tpu.memory_space<vmem>>, vector<1x32xf32>
    tpu.vector_store %arg12[%c0_51, %c0_52], %189 {strides = array<i32>} : memref<8x32xf32, #tpu.memory_space<vmem>>, vector<1x32xf32>,
    %cst_53 = arith.constant dense<0.000000e+00> : vector<1x128xf32>
    %191 = tpu.matmul %189, %164, %cst_53 {dimension_numbers = #tpu.dot_dimension_numbers<[1], [0], [0], [1], [0, 0, 1, 1], [], []>} : vector<1x32xf32>, vector<32x128xf32>, vector<1x128xf32> -> vector<1x128xf32>
    %192 = vector.extract_strided_slice %169 {offsets = [1, 0], sizes = [1, 128], strides = [1, 1]} : vector<8x128xf32> to vector<1x128xf32>
    %193 = arith.addf %191, %192 : vector<1x128xf32>
    %194 = arith.negf %193 : vector<1x128xf32>
    %195 = math.exp %194 : vector<1x128xf32>
    %cst_54 = arith.constant 1.000000e+00 : f32
    %196 = vector.broadcast %cst_54 : f32 to vector<1x128xf32>
    %197 = arith.addf %196, %195 : vector<1x128xf32>
    %198 = arith.divf %196, %197 : vector<1x128xf32>
    %199 = math.tanh %193 : vector<1x128xf32>
    %200 = vector.extract_strided_slice %198 {offsets = [0, 0], sizes = [1, 32], strides = [1, 1]} : vector<1x128xf32> to vector<1x32xf32>
    %201 = vector.extract_strided_slice %198 {offsets = [0, 32], sizes = [1, 32], strides = [1, 1]} : vector<1x128xf32> to vector<1x32xf32>
    %202 = vector.extract_strided_slice %199 {offsets = [0, 64], sizes = [1, 32], strides = [1, 1]} : vector<1x128xf32> to vector<1x32xf32>
    %203 = vector.extract_strided_slice %198 {offsets = [0, 96], sizes = [1, 32], strides = [1, 1]} : vector<1x128xf32> to vector<1x32xf32>
    %204 = arith.mulf %201, %187 : vector<1x32xf32>
    %205 = arith.mulf %200, %202 : vector<1x32xf32>
    %206 = arith.addf %204, %205 : vector<1x32xf32>
    %207 = math.tanh %206 : vector<1x32xf32>
    %208 = arith.mulf %203, %207 : vector<1x32xf32>
    %c1_55 = arith.constant 1 : index
    %c0_56 = arith.constant 0 : index
    %209 = vector.load %arg12[%c1_55, %c0_56] : memref<8x32xf32, #tpu.memory_space<vmem>>, vector<1x32xf32>
    tpu.vector_store %arg12[%c1_55, %c0_56], %208 {strides = array<i32>} : memref<8x32xf32, #tpu.memory_space<vmem>>, vector<1x32xf32>,
    %cst_57 = arith.constant dense<0.000000e+00> : vector<1x128xf32>
    %210 = tpu.matmul %208, %164, %cst_57 {dimension_numbers = #tpu.dot_dimension_numbers<[1], [0], [0], [1], [0, 0, 1, 1], [], []>} : vector<1x32xf32>, vector<32x128xf32>, vector<1x128xf32> -> vector<1x128xf32>
    %211 = vector.extract_strided_slice %169 {offsets = [2, 0], sizes = [1, 128], strides = [1, 1]} : vector<8x128xf32> to vector<1x128xf32>
    %212 = arith.addf %210, %211 : vector<1x128xf32>
    %213 = arith.negf %212 : vector<1x128xf32>
    %214 = math.exp %213 : vector<1x128xf32>
    %cst_58 = arith.constant 1.000000e+00 : f32
    %215 = vector.broadcast %cst_58 : f32 to vector<1x128xf32>
    %216 = arith.addf %215, %214 : vector<1x128xf32>
    %217 = arith.divf %215, %216 : vector<1x128xf32>
    %218 = math.tanh %212 : vector<1x128xf32>
    %219 = vector.extract_strided_slice %217 {offsets = [0, 0], sizes = [1, 32], strides = [1, 1]} : vector<1x128xf32> to vector<1x32xf32>
    %220 = vector.extract_strided_slice %217 {offsets = [0, 32], sizes = [1, 32], strides = [1, 1]} : vector<1x128xf32> to vector<1x32xf32>
    %221 = vector.extract_strided_slice %218 {offsets = [0, 64], sizes = [1, 32], strides = [1, 1]} : vector<1x128xf32> to vector<1x32xf32>
    %222 = vector.extract_strided_slice %217 {offsets = [0, 96], sizes = [1, 32], strides = [1, 1]} : vector<1x128xf32> to vector<1x32xf32>
    %223 = arith.mulf %220, %206 : vector<1x32xf32>
    %224 = arith.mulf %219, %221 : vector<1x32xf32>
    %225 = arith.addf %223, %224 : vector<1x32xf32>
    %226 = math.tanh %225 : vector<1x32xf32>
    %227 = arith.mulf %222, %226 : vector<1x32xf32>
    %c2_59 = arith.constant 2 : index
    %c0_60 = arith.constant 0 : index
    %228 = vector.load %arg12[%c2_59, %c0_60] : memref<8x32xf32, #tpu.memory_space<vmem>>, vector<1x32xf32>
    tpu.vector_store %arg12[%c2_59, %c0_60], %227 {strides = array<i32>} : memref<8x32xf32, #tpu.memory_space<vmem>>, vector<1x32xf32>,
    %cst_61 = arith.constant dense<0.000000e+00> : vector<1x128xf32>
    %229 = tpu.matmul %227, %164, %cst_61 {dimension_numbers = #tpu.dot_dimension_numbers<[1], [0], [0], [1], [0, 0, 1, 1], [], []>} : vector<1x32xf32>, vector<32x128xf32>, vector<1x128xf32> -> vector<1x128xf32>
    %230 = vector.extract_strided_slice %169 {offsets = [3, 0], sizes = [1, 128], strides = [1, 1]} : vector<8x128xf32> to vector<1x128xf32>
    %231 = arith.addf %229, %230 : vector<1x128xf32>
    %232 = arith.negf %231 : vector<1x128xf32>
    %233 = math.exp %232 : vector<1x128xf32>
    %cst_62 = arith.constant 1.000000e+00 : f32
    %234 = vector.broadcast %cst_62 : f32 to vector<1x128xf32>
    %235 = arith.addf %234, %233 : vector<1x128xf32>
    %236 = arith.divf %234, %235 : vector<1x128xf32>
    %237 = math.tanh %231 : vector<1x128xf32>
    %238 = vector.extract_strided_slice %236 {offsets = [0, 0], sizes = [1, 32], strides = [1, 1]} : vector<1x128xf32> to vector<1x32xf32>
    %239 = vector.extract_strided_slice %236 {offsets = [0, 32], sizes = [1, 32], strides = [1, 1]} : vector<1x128xf32> to vector<1x32xf32>
    %240 = vector.extract_strided_slice %237 {offsets = [0, 64], sizes = [1, 32], strides = [1, 1]} : vector<1x128xf32> to vector<1x32xf32>
    %241 = vector.extract_strided_slice %236 {offsets = [0, 96], sizes = [1, 32], strides = [1, 1]} : vector<1x128xf32> to vector<1x32xf32>
    %242 = arith.mulf %239, %225 : vector<1x32xf32>
    %243 = arith.mulf %238, %240 : vector<1x32xf32>
    %244 = arith.addf %242, %243 : vector<1x32xf32>
    %245 = math.tanh %244 : vector<1x32xf32>
    %246 = arith.mulf %241, %245 : vector<1x32xf32>
    %c3_63 = arith.constant 3 : index
    %c0_64 = arith.constant 0 : index
    %247 = vector.load %arg12[%c3_63, %c0_64] : memref<8x32xf32, #tpu.memory_space<vmem>>, vector<1x32xf32>
    tpu.vector_store %arg12[%c3_63, %c0_64], %246 {strides = array<i32>} : memref<8x32xf32, #tpu.memory_space<vmem>>, vector<1x32xf32>,
    %cst_65 = arith.constant dense<0.000000e+00> : vector<1x128xf32>
    %248 = tpu.matmul %246, %164, %cst_65 {dimension_numbers = #tpu.dot_dimension_numbers<[1], [0], [0], [1], [0, 0, 1, 1], [], []>} : vector<1x32xf32>, vector<32x128xf32>, vector<1x128xf32> -> vector<1x128xf32>
    %249 = vector.extract_strided_slice %169 {offsets = [4, 0], sizes = [1, 128], strides = [1, 1]} : vector<8x128xf32> to vector<1x128xf32>
    %250 = arith.addf %248, %249 : vector<1x128xf32>
    %251 = arith.negf %250 : vector<1x128xf32>
    %252 = math.exp %251 : vector<1x128xf32>
    %cst_66 = arith.constant 1.000000e+00 : f32
    %253 = vector.broadcast %cst_66 : f32 to vector<1x128xf32>
    %254 = arith.addf %253, %252 : vector<1x128xf32>
    %255 = arith.divf %253, %254 : vector<1x128xf32>
    %256 = math.tanh %250 : vector<1x128xf32>
    %257 = vector.extract_strided_slice %255 {offsets = [0, 0], sizes = [1, 32], strides = [1, 1]} : vector<1x128xf32> to vector<1x32xf32>
    %258 = vector.extract_strided_slice %255 {offsets = [0, 32], sizes = [1, 32], strides = [1, 1]} : vector<1x128xf32> to vector<1x32xf32>
    %259 = vector.extract_strided_slice %256 {offsets = [0, 64], sizes = [1, 32], strides = [1, 1]} : vector<1x128xf32> to vector<1x32xf32>
    %260 = vector.extract_strided_slice %255 {offsets = [0, 96], sizes = [1, 32], strides = [1, 1]} : vector<1x128xf32> to vector<1x32xf32>
    %261 = arith.mulf %258, %244 : vector<1x32xf32>
    %262 = arith.mulf %257, %259 : vector<1x32xf32>
    %263 = arith.addf %261, %262 : vector<1x32xf32>
    %264 = math.tanh %263 : vector<1x32xf32>
    %265 = arith.mulf %260, %264 : vector<1x32xf32>
    %c4_67 = arith.constant 4 : index
    %c0_68 = arith.constant 0 : index
    %266 = vector.load %arg12[%c4_67, %c0_68] : memref<8x32xf32, #tpu.memory_space<vmem>>, vector<1x32xf32>
    tpu.vector_store %arg12[%c4_67, %c0_68], %265 {strides = array<i32>} : memref<8x32xf32, #tpu.memory_space<vmem>>, vector<1x32xf32>,
    %cst_69 = arith.constant dense<0.000000e+00> : vector<1x128xf32>
    %267 = tpu.matmul %265, %164, %cst_69 {dimension_numbers = #tpu.dot_dimension_numbers<[1], [0], [0], [1], [0, 0, 1, 1], [], []>} : vector<1x32xf32>, vector<32x128xf32>, vector<1x128xf32> -> vector<1x128xf32>
    %268 = vector.extract_strided_slice %169 {offsets = [5, 0], sizes = [1, 128], strides = [1, 1]} : vector<8x128xf32> to vector<1x128xf32>
    %269 = arith.addf %267, %268 : vector<1x128xf32>
    %270 = arith.negf %269 : vector<1x128xf32>
    %271 = math.exp %270 : vector<1x128xf32>
    %cst_70 = arith.constant 1.000000e+00 : f32
    %272 = vector.broadcast %cst_70 : f32 to vector<1x128xf32>
    %273 = arith.addf %272, %271 : vector<1x128xf32>
    %274 = arith.divf %272, %273 : vector<1x128xf32>
    %275 = math.tanh %269 : vector<1x128xf32>
    %276 = vector.extract_strided_slice %274 {offsets = [0, 0], sizes = [1, 32], strides = [1, 1]} : vector<1x128xf32> to vector<1x32xf32>
    %277 = vector.extract_strided_slice %274 {offsets = [0, 32], sizes = [1, 32], strides = [1, 1]} : vector<1x128xf32> to vector<1x32xf32>
    %278 = vector.extract_strided_slice %275 {offsets = [0, 64], sizes = [1, 32], strides = [1, 1]} : vector<1x128xf32> to vector<1x32xf32>
    %279 = vector.extract_strided_slice %274 {offsets = [0, 96], sizes = [1, 32], strides = [1, 1]} : vector<1x128xf32> to vector<1x32xf32>
    %280 = arith.mulf %277, %263 : vector<1x32xf32>
    %281 = arith.mulf %276, %278 : vector<1x32xf32>
    %282 = arith.addf %280, %281 : vector<1x32xf32>
    %283 = math.tanh %282 : vector<1x32xf32>
    %284 = arith.mulf %279, %283 : vector<1x32xf32>
    %c5_71 = arith.constant 5 : index
    %c0_72 = arith.constant 0 : index
    %285 = vector.load %arg12[%c5_71, %c0_72] : memref<8x32xf32, #tpu.memory_space<vmem>>, vector<1x32xf32>
    tpu.vector_store %arg12[%c5_71, %c0_72], %284 {strides = array<i32>} : memref<8x32xf32, #tpu.memory_space<vmem>>, vector<1x32xf32>,
    %cst_73 = arith.constant dense<0.000000e+00> : vector<1x128xf32>
    %286 = tpu.matmul %284, %164, %cst_73 {dimension_numbers = #tpu.dot_dimension_numbers<[1], [0], [0], [1], [0, 0, 1, 1], [], []>} : vector<1x32xf32>, vector<32x128xf32>, vector<1x128xf32> -> vector<1x128xf32>
    %287 = vector.extract_strided_slice %169 {offsets = [6, 0], sizes = [1, 128], strides = [1, 1]} : vector<8x128xf32> to vector<1x128xf32>
    %288 = arith.addf %286, %287 : vector<1x128xf32>
    %289 = arith.negf %288 : vector<1x128xf32>
    %290 = math.exp %289 : vector<1x128xf32>
    %cst_74 = arith.constant 1.000000e+00 : f32
    %291 = vector.broadcast %cst_74 : f32 to vector<1x128xf32>
    %292 = arith.addf %291, %290 : vector<1x128xf32>
    %293 = arith.divf %291, %292 : vector<1x128xf32>
    %294 = math.tanh %288 : vector<1x128xf32>
    %295 = vector.extract_strided_slice %293 {offsets = [0, 0], sizes = [1, 32], strides = [1, 1]} : vector<1x128xf32> to vector<1x32xf32>
    %296 = vector.extract_strided_slice %293 {offsets = [0, 32], sizes = [1, 32], strides = [1, 1]} : vector<1x128xf32> to vector<1x32xf32>
    %297 = vector.extract_strided_slice %294 {offsets = [0, 64], sizes = [1, 32], strides = [1, 1]} : vector<1x128xf32> to vector<1x32xf32>
    %298 = vector.extract_strided_slice %293 {offsets = [0, 96], sizes = [1, 32], strides = [1, 1]} : vector<1x128xf32> to vector<1x32xf32>
    %299 = arith.mulf %296, %282 : vector<1x32xf32>
    %300 = arith.mulf %295, %297 : vector<1x32xf32>
    %301 = arith.addf %299, %300 : vector<1x32xf32>
    %302 = math.tanh %301 : vector<1x32xf32>
    %303 = arith.mulf %298, %302 : vector<1x32xf32>
    %c6_75 = arith.constant 6 : index
    %c0_76 = arith.constant 0 : index
    %304 = vector.load %arg12[%c6_75, %c0_76] : memref<8x32xf32, #tpu.memory_space<vmem>>, vector<1x32xf32>
    tpu.vector_store %arg12[%c6_75, %c0_76], %303 {strides = array<i32>} : memref<8x32xf32, #tpu.memory_space<vmem>>, vector<1x32xf32>,
    %cst_77 = arith.constant dense<0.000000e+00> : vector<1x128xf32>
    %305 = tpu.matmul %303, %164, %cst_77 {dimension_numbers = #tpu.dot_dimension_numbers<[1], [0], [0], [1], [0, 0, 1, 1], [], []>} : vector<1x32xf32>, vector<32x128xf32>, vector<1x128xf32> -> vector<1x128xf32>
    %306 = vector.extract_strided_slice %169 {offsets = [7, 0], sizes = [1, 128], strides = [1, 1]} : vector<8x128xf32> to vector<1x128xf32>
    %307 = arith.addf %305, %306 : vector<1x128xf32>
    %308 = arith.negf %307 : vector<1x128xf32>
    %309 = math.exp %308 : vector<1x128xf32>
    %cst_78 = arith.constant 1.000000e+00 : f32
    %310 = vector.broadcast %cst_78 : f32 to vector<1x128xf32>
    %311 = arith.addf %310, %309 : vector<1x128xf32>
    %312 = arith.divf %310, %311 : vector<1x128xf32>
    %313 = math.tanh %307 : vector<1x128xf32>
    %314 = vector.extract_strided_slice %312 {offsets = [0, 0], sizes = [1, 32], strides = [1, 1]} : vector<1x128xf32> to vector<1x32xf32>
    %315 = vector.extract_strided_slice %312 {offsets = [0, 32], sizes = [1, 32], strides = [1, 1]} : vector<1x128xf32> to vector<1x32xf32>
    %316 = vector.extract_strided_slice %313 {offsets = [0, 64], sizes = [1, 32], strides = [1, 1]} : vector<1x128xf32> to vector<1x32xf32>
    %317 = vector.extract_strided_slice %312 {offsets = [0, 96], sizes = [1, 32], strides = [1, 1]} : vector<1x128xf32> to vector<1x32xf32>
    %318 = arith.mulf %315, %301 : vector<1x32xf32>
    %319 = arith.mulf %314, %316 : vector<1x32xf32>
    %320 = arith.addf %318, %319 : vector<1x32xf32>
    %321 = math.tanh %320 : vector<1x32xf32>
    %322 = arith.mulf %317, %321 : vector<1x32xf32>
    %c7_79 = arith.constant 7 : index
    %c0_80 = arith.constant 0 : index
    %323 = vector.load %arg12[%c7_79, %c0_80] : memref<8x32xf32, #tpu.memory_space<vmem>>, vector<1x32xf32>
    tpu.vector_store %arg12[%c7_79, %c0_80], %322 {strides = array<i32>} : memref<8x32xf32, #tpu.memory_space<vmem>>, vector<1x32xf32>,
    %c1_81 = arith.constant 1 : index
    %c0_82 = arith.constant 0 : index
    %324 = vector.load %arg10[%c1_81, %c0_82] : memref<2x32xf32, #tpu.memory_space<vmem>>, vector<1x32xf32>
    tpu.vector_store %arg10[%c1_81, %c0_82], %322 {strides = array<i32>} : memref<2x32xf32, #tpu.memory_space<vmem>>, vector<1x32xf32>,
    %c1_83 = arith.constant 1 : index
    %c0_84 = arith.constant 0 : index
    %325 = vector.load %arg11[%c1_83, %c0_84] : memref<2x32xf32, #tpu.memory_space<vmem>>, vector<1x32xf32>
    tpu.vector_store %arg11[%c1_83, %c0_84], %320 {strides = array<i32>} : memref<2x32xf32, #tpu.memory_space<vmem>>, vector<1x32xf32>,
    %c0_85 = arith.constant 0 : index
    %c0_86 = arith.constant 0 : index
    %326 = vector.load %arg12[%c0_85, %c0_86] : memref<8x32xf32, #tpu.memory_space<vmem>>, vector<8x32xf32>
    %c0_87 = arith.constant 0 : index
    %c0_88 = arith.constant 0 : index
    %327 = vector.load %arg7[%c0_87, %c0_88] : memref<32x128xf32, #tpu.memory_space<vmem>>, vector<32x128xf32>
    %cst_89 = arith.constant dense<0.000000e+00> : vector<8x128xf32>
    %328 = tpu.matmul %326, %327, %cst_89 {dimension_numbers = #tpu.dot_dimension_numbers<[1], [0], [0], [1], [0, 0, 1, 1], [], []>} : vector<8x32xf32>, vector<32x128xf32>, vector<8x128xf32> -> vector<8x128xf32>
    %c0_90 = arith.constant 0 : index
    %c0_91 = arith.constant 0 : index
    %329 = vector.load %arg8[%c0_90, %c0_91] : memref<1x128xf32, #tpu.memory_space<vmem>>, vector<1x128xf32>
    %330 = vector.broadcast %329 : vector<1x128xf32> to vector<8x128xf32>
    %331 = arith.addf %328, %330 : vector<8x128xf32>
    %c0_92 = arith.constant 0 : index
    %c0_93 = arith.constant 0 : index
    %332 = vector.load %arg9[%c0_92, %c0_93] : memref<8x128xf32, #tpu.memory_space<vmem>>, vector<8x128xf32>
    tpu.vector_store %arg9[%c0_92, %c0_93], %331 {strides = array<i32>} : memref<8x128xf32, #tpu.memory_space<vmem>>, vector<8x128xf32>,
    return
  }
}

</mosaic_0001>

<bundles_post_ra>
// kernel: tpu_custom_call.1
= control target key start
LH: loop header
LB: loop body
LE: loop exit
PB: predicated region body
PF: predicated region fallthrough
CT: control target
= control target key end

     0   :  { %17 = vsyncpa [#allocation4], 0  ;;  %s3334_s0 = inlined_call_operand.hbm [shape: f32[8,16], index: 0, kind: input, shape index: {}]   ;;  %s3335_s1 = inlined_call_operand.hbm [shape: f32[16,128], index: 1, kind: input, shape index: {}]   ;;  %s3336_s2 = inlined_call_operand.hbm [shape: f32[32,128], index: 2, kind: input, shape index: {}]   ;;  %s3337_s3 = inlined_call_operand.vmem [shape: f32[1,128], index: 3, kind: input, shape index: {}]   ;;  %s3338_s4 = inlined_call_operand.hbm [shape: f32[32,128], index: 4, kind: input, shape index: {}]   ;;  %s3339_s5 = inlined_call_operand.hbm [shape: f32[32,128], index: 5, kind: input, shape index: {}]   ;;  %s3340_s6 = inlined_call_operand.vmem [shape: f32[1,128], index: 6, kind: input, shape index: {}]   ;;  %s3341_s7 = inlined_call_operand.hbm [shape: f32[32,128], index: 7, kind: input, shape index: {}]   ;;  %s3342_s8 = inlined_call_operand.vmem [shape: f32[1,128], index: 8, kind: input, shape index: {}]   ;;  %s3343_s9 = inlined_call_operand.hbm [shape: f32[8,128], index: 9, kind: output, shape index: {0}]   ;;  %s3344_s10 = inlined_call_operand.hbm [shape: f32[2,32], index: 10, kind: output, shape index: {1}]   ;;  %s3345_s11 = inlined_call_operand.hbm [shape: f32[2,32], index: 11, kind: output, shape index: {2}]  }
   0x1   :  { %18 = vsyncpa [#allocation7], 0 }
   0x2   :  { %19 = vsyncpa [#allocation10], 0 }
   0x3   :  { %20 = vsyncpa [#allocation13], 0 }
   0x4   :  { %21 = vsyncpa [#allocation5], 0 }
   0x5   :  { %22 = vsyncpa [#allocation16], 0  ;;  %s2884_s17 = smov [#allocation6]   ;;  %s2674_s21 = scalar_lea.hbm %s3335_s1, 256 }
   0x6   :  { %s38_s18 = sshll.u32 %s2884_s17, 4  ;;  %p2675_p0 = scmp.ne.s32.totalorder %s3335_s1, %s2674_s21  ;;  %s39_s18 = int_to_ptr.vmem [resolvable:$true] %s38_s18 }
   0x7   :  { %p2678_p1 = scmp.lt.u32.totalorder %s2674_s21, %s3335_s1 }
   0x9   :  { %p2680_p2 = pnand %p2678_p1, %p2675_p0 }
   0xb   :  { %2683 = shalt.err (!%p2680_p2)
}
   0xc   :  { %s2684_s26 = scalar_lea.vmem %s39_s18, 256  ;;  %p2689_p4 = scmp.lt.s32.totalorder %s39_s18, %s39_s18 }
   0xd   :  { %p2685_p3 = scmp.ne.s32.totalorder %s39_s18, %s2684_s26  ;;  %p2690_p5 = scmp.lt.s32.totalorder %s2684_s26, %s2684_s26 }
   0xf   :  { %p2691_p6 = por %p2690_p5, %p2689_p4 }
  0x11   :  { %p2692_p7 = pnand %p2691_p6, %p2685_p3 }
  0x13   :  { %2695 = shalt.err (!%p2692_p7)
}
  0x14   :  { %s2885_s27 = smov 128   ;;  %s2886_s28 = smov 8  }
  0x15   :  { %44 = dma.hbm_to_vmem [thread:$0]  %s3335_s1, 256, %s39_s18, [#allocation7], %s2885_s27, %s2885_s27, %s2886_s28  }
  0x16   :  { %s2887_s12 = smov [#allocation9]   ;;  %s2888_s14 = smov [#allocation3]  }
  0x17   :  { %s64_s13 = sshll.u32 %s2887_s12, 4  ;;  %s29_s15 = sshll.u32 %s2888_s14, 4  ;;  %s65_s13 = int_to_ptr.vmem [resolvable:$true] %s64_s13  ;;  %s30_s15 = int_to_ptr.vmem [resolvable:$true] %s29_s15 }
  0x18   :  { %s2696_s19 = scalar_lea.hbm %s3338_s4, 512 }
  0x19   :  { %p2697_p8 = scmp.ne.s32.totalorder %s3338_s4, %s2696_s19  ;;  %p2700_p9 = scmp.lt.u32.totalorder %s2696_s19, %s3338_s4 }
  0x1b   :  { %p2702_p10 = pnand %p2700_p9, %p2697_p8 }
  0x1d   :  { %2705 = shalt.err (!%p2702_p10)
}
  0x1e   :  { %s2706_s1 = scalar_lea.vmem %s65_s13, 512  ;;  %p2711_p12 = scmp.lt.s32.totalorder %s65_s13, %s65_s13 }
  0x1f   :  { %p2707_p11 = scmp.ne.s32.totalorder %s65_s13, %s2706_s1  ;;  %p2712_p13 = scmp.lt.s32.totalorder %s2706_s1, %s2706_s1 }
  0x21   :  { %p2713_p0 = por %p2712_p13, %p2711_p12 }
  0x23   :  { %p2714_p1 = pnand %p2713_p0, %p2707_p11 }
  0x25   :  { %2717 = shalt.err (!%p2714_p1)
}
  0x26   :  { %70 = dma.hbm_to_vmem [thread:$0]  %s3338_s4, 512, %s65_s13, [#allocation10], %s2885_s27, %s2885_s27, %s2886_s28  }
  0x27   :  { %s2718_s29 = scalar_lea.hbm %s3334_s0, 128 }
  0x28   :  { %p2719_p2 = scmp.ne.s32.totalorder %s3334_s0, %s2718_s29  ;;  %p2722_p3 = scmp.lt.u32.totalorder %s2718_s29, %s3334_s0 }
  0x2a   :  { %p2724_p4 = pnand %p2722_p3, %p2719_p2 }
  0x2c   :  { %2727 = shalt.err (!%p2724_p4)
}
  0x2d   :  { %s2728_s17 = scalar_lea.vmem %s30_s15, 128  ;;  %p2733_p6 = scmp.lt.s32.totalorder %s30_s15, %s30_s15 }
  0x2e   :  { %p2729_p5 = scmp.ne.s32.totalorder %s30_s15, %s2728_s17  ;;  %p2734_p7 = scmp.lt.s32.totalorder %s2728_s17, %s2728_s17 }
  0x30   :  { %p2735_p8 = por %p2734_p7, %p2733_p6 }
  0x32   :  { %p2736_p9 = pnand %p2735_p8, %p2729_p5 }
  0x34   :  { %2739 = shalt.err (!%p2736_p9)
}
  0x35   :  { %32 = dma.hbm_to_vmem [thread:$0]  %s3334_s0, 128, %s30_s15, [#allocation4]  }
  0x36   :  { %s2889_s19 = smov [#allocation8]   ;;  %s2890_s21 = smov [#allocation11]  }
  0x37   :  { %s50_s20 = sshll.u32 %s2889_s19, 4  ;;  %s76_s22 = sshll.u32 %s2890_s21, 4  ;;  %s51_s20 = int_to_ptr.vmem [resolvable:$true] %s50_s20  ;;  %s77_s22 = int_to_ptr.vmem [resolvable:$true] %s76_s22 }
  0x38   :  { %s2740_s18 = scalar_lea.hbm %s3336_s2, 512 }
  0x39   :  { %p2741_p10 = scmp.ne.s32.totalorder %s3336_s2, %s2740_s18  ;;  %p2744_p11 = scmp.lt.u32.totalorder %s2740_s18, %s3336_s2 }
  0x3b   :  { %p2746_p12 = pnand %p2744_p11, %p2741_p10 }
  0x3d   :  { %2749 = shalt.err (!%p2746_p12)
}
  0x3e   :  { %s2750_s0 = scalar_lea.vmem %s51_s20, 512  ;;  %p2755_p0 = scmp.lt.s32.totalorder %s51_s20, %s51_s20 }
  0x3f   :  { %p2751_p13 = scmp.ne.s32.totalorder %s51_s20, %s2750_s0  ;;  %p2756_p1 = scmp.lt.s32.totalorder %s2750_s0, %s2750_s0 }
  0x41   :  { %p2757_p2 = por %p2756_p1, %p2755_p0 }
  0x43   :  { %p2758_p3 = pnand %p2757_p2, %p2751_p13 }
  0x45   :  { %2761 = shalt.err (!%p2758_p3)
}
  0x46   :  { %56 = dma.hbm_to_vmem [thread:$0]  %s3336_s2, 512, %s51_s20, [#allocation7], %s2885_s27, %s2885_s27, %s2886_s28  }
  0x47   :  { %s2762_s16 = scalar_lea.hbm %s3339_s5, 512 }
  0x48   :  { %p2763_p4 = scmp.ne.s32.totalorder %s3339_s5, %s2762_s16  ;;  %p2766_p5 = scmp.lt.u32.totalorder %s2762_s16, %s3339_s5 }
  0x4a   :  { %p2768_p6 = pnand %p2766_p5, %p2763_p4 }
  0x4c   :  { %2771 = shalt.err (!%p2768_p6)
}
  0x4d   :  { %s2772_s21 = scalar_lea.vmem %s77_s22, 512  ;;  %p2777_p8 = scmp.lt.s32.totalorder %s77_s22, %s77_s22 }
  0x4e   :  { %p2773_p7 = scmp.ne.s32.totalorder %s77_s22, %s2772_s21  ;;  %p2778_p9 = scmp.lt.s32.totalorder %s2772_s21, %s2772_s21 }
  0x50   :  { %p2779_p10 = por %p2778_p9, %p2777_p8 }
  0x52   :  { %p2780_p11 = pnand %p2779_p10, %p2773_p7 }
  0x54   :  { %2783 = shalt.err (!%p2780_p11)
}
  0x55   :  { %82 = dma.hbm_to_vmem [thread:$0]  %s3339_s5, 512, %s77_s22, [#allocation10], %s2885_s27, %s2885_s27, %s2886_s28  }
  0x56   :  { %s2891_s23 = smov [#allocation12]   ;;  %s2784_s25 = scalar_lea.hbm %s3341_s7, 512 }
  0x57   :  { %s90_s1 = sshll.u32 %s2891_s23, 4  ;;  %p2785_p12 = scmp.ne.s32.totalorder %s3341_s7, %s2784_s25  ;;  %s91_s1 = int_to_ptr.vmem [resolvable:$true] %s90_s1 }
  0x58   :  { %p2788_p13 = scmp.lt.u32.totalorder %s2784_s25, %s3341_s7 }
  0x5a   :  { %p2790_p0 = pnand %p2788_p13, %p2785_p12 }
  0x5c   :  { %2793 = shalt.err (!%p2790_p0)
}
  0x5d   :  { %s2794_s30 = scalar_lea.vmem %s91_s1, 512  ;;  %p2799_p2 = scmp.lt.s32.totalorder %s91_s1, %s91_s1 }
  0x5e   :  { %p2795_p1 = scmp.ne.s32.totalorder %s91_s1, %s2794_s30  ;;  %p2800_p3 = scmp.lt.s32.totalorder %s2794_s30, %s2794_s30 }
  0x60   :  { %p2801_p4 = por %p2800_p3, %p2799_p2 }
  0x62   :  { %p2802_p5 = pnand %p2801_p4, %p2795_p1 }
  0x64   :  { %2805 = shalt.err (!%p2802_p5)
}
  0x65   :  { %96 = dma.hbm_to_vmem [thread:$0]  %s3341_s7, 512, %s91_s1, [#allocation13], %s2885_s27, %s2885_s27, %s2886_s28  }
  0x66   :  { %2872 = dma.done.wait [#allocation4], 128  }
  0x67   :  { %2873 = vsyncadd [#allocation4], 4294967168 }
  0x68   :  { %2874 = dma.done.wait [#allocation7], 768  }
  0x69   :  { %2875 = vsyncadd [#allocation7], 4294966528 }
  0x6a   :  { %2876 = dma.done.wait [#allocation10], 1024  }
  0x6b   :  { %2877 = vsyncadd [#allocation10], 4294966272 }
  0x6c   :  { %2878 = dma.done.wait [#allocation13], 512  }
  0x6d   :  { %2879 = vsyncadd [#allocation13], 4294966784  ;;  %v2892_v0 = vmov 0.0|0.0   ;;  %vm2893_vm0 = vmmov 0   ;;  %v2894_v1 = vmov 0.0   ;;  %v119_v2 = vld [vmem:[#allocation8] sm:$0xff] }
  0x6e   :  { %2421 = vmatprep.subr.bf16.mxu1 %v2892_v0  ;;  %2418 = vmatprep.subr.bf16.mxu0 %v2892_v0  ;;  %v120_v3 = vld [vmem:[#allocation8 + $0x8] sm:$0xff]  ;;  %v117_v4 = vld [vmem:[#allocation6] sm:$0xff]  ;;  %v118_v6 = vld [vmem:[#allocation6 + $0x8] sm:$0xff]  ;;  %vm131_vm1 = vcmask 130048   ;;  %s2895_s28 = smov 64   ;;  %vm307_vm2 = vcmask 253952  }
  0x6f   :  { %2217 = vmatprep.mubr.msk.f32.mxu0 %vm2893_vm0, %v2894_v1  ;;  %2228 = vmatprep.mubr.msk.f32.mxu1 %vm2893_vm0, %v2894_v1  ;;  %v3054_v5 = vpack.c.bf16 %v120_v3, %v119_v2  ;;  %v121_v7 = vld [vmem:[#allocation8 + $0x10] sm:$0xff]  ;;  %v2419_v8 = vpack.c.bf16 %v118_v6, %v117_v4  ;;  %v122_v9 = vld [vmem:[#allocation8 + $0x18] sm:$0xff]  ;;  %v124_v11 = vld [vmem:[#allocation3] sm:$0xff]  ;;  %vm205_vm3 = vcmask 261120   ;;  %s2898_s16 = smov [#allocation15]  }
  0x70   :  { %v3057_v10 = vpack.c.bf16 %v122_v9, %v121_v7  ;;  %v2084_v12 = vld [vmem:[%s3337_s3] ss:$0 sm:$0xff]  ;;  %s2896_s3 = smov 32   ;;  %s2055_s17 = sshll.u32 %s2898_s16, 4  ;;  %s2056_s17 = int_to_ptr.vmem [resolvable:$true] %s2055_s17 }
  0x71   :  { %2423 = vmatpush3.bf16.msra.mxu1 %v3054_v5  ;;  %2420 = vmatpush3.bf16.msra.mxu0 %v2419_v8  ;;  %s2806_s4 = scalar_lea.vmem %s2056_s17, 32  ;;  %p2811_p7 = scmp.lt.s32.totalorder %s2056_s17, %s2056_s17 }
  0x72   :  { %2424 = vmatprep.subr.bf16.mxu1 %v2892_v0  ;;  %2427 = vmatprep.subr.bf16.mxu0 %v2892_v0  ;;  %p2807_p6 = scmp.ne.s32.totalorder %s2056_s17, %s2806_s4  ;;  %p2812_p8 = scmp.lt.s32.totalorder %s2806_s4, %s2806_s4 }
  0x74   :  { %2218 = vmatmul.mubr.msk.f32.vlgmr.msra.gmra.mrb[0].mxu0 %vm131_vm1, %v124_v11  ;;  %p2813_p9 = por %p2812_p8, %p2811_p7 }
  0x75   :  { %2426 = vmatpush3.bf16.msra.mxu1 %v3057_v10  ;;  %2429 = vmatpush3.bf16.msra.mxu0 %v3054_v5 }
  0x76   :  { %2239 = vmatprep.mubr.msk.f32.mxu0 %vm2893_vm0, %v2894_v1  ;;  %2430 = vmatprep.subr.bf16.mxu0 %v2892_v0  ;;  %p2814_p10 = pnand %p2813_p9, %p2807_p6 }
  0x77   :  { %2433 = vmatprep.subr.bf16.mxu1 %v2892_v0 }
  0x78   :  { %2229 = vmatmul.mubr.f32.vlgmr.msra.gmra.mrb[0].mxu1 %v2894_v1 }
  0x79   :  { %2435 = vmatpush3.bf16.msra.mxu1 %v3054_v5  ;;  %2250 = vmatprep.mubr.msk.f32.mxu1 %vm2893_vm0, %v2894_v1 }
  0x7a   :  { %2432 = vmatpush3.bf16.msra.mxu0 %v3057_v10  ;;  %2436 = vmatprep.subr.bf16.mxu1 %v2892_v0 }
  0x7b   :  { %2439 = vmatprep.subr.bf16.mxu0 %v2892_v0 }
  0x7d   :  { %2438 = vmatpush3.bf16.msra.mxu1 %v3057_v10 }
  0x7e   :  { %2445 = vmatprep.subr.bf16.mxu1 %v2892_v0 }
 0x147   :  { %v201_v13 = vpop.f32.mrb[0].mxu0 }
 0x148   :  { %v3079_v14 = vadd.f32 %v2084_v12, %v201_v13  ;;  %v2219_v15 = vpop.f32.mrb[1].mxu0 }
 0x14a   :  { %v310_v33 = vrot.slane %v3079_v14, 1  ;;  %v413_v51 = vrot.slane %v3079_v14, 2  ;;  %v516_v8 = vrot.slane %v3079_v14, 3 }
 0x14b   :  { %v275_v16 = vpop.f32.mrb[0].mxu1 }
 0x14c   :  { %v276_v17 = vadd.f32 %v275_v16, %v3079_v14  ;;  %v2230_v18 = vpop.f32.mrb[1].mxu1 }
 0x14e   :  { %2546 = vtanh.f32 %v276_v17  ;;  %v2086_v20 = vmul.f32 -1.442695, %v276_v17 }
 0x150   :  { %2548 = vpow2.f32 %v2086_v20 }
 0x158   :  { %v2547_v19 = vpop.eup %2546 }
 0x159   :  { %288 = vrot.lane.b32.xlu0 %v2547_v19, %s2895_s28 }
 0x15a   :  { %v2549_v21 = vpop.eup %2548 }
 0x15b   :  { %v282_v22 = vadd.f32 1.0, %v2549_v21 }
 0x15d   :  { %2550 = vrcp.f32 %v282_v22 }
 0x167   :  { %v2551_v23 = vpop.eup %2550 }
 0x168   :  { %v286_v26 = vmul.f32 0.0, %v2551_v23 }
 0x1cb   :  { %v289_v24 = vpop.permute.xlu0 %288 }
 0x1cc   :  { %v291_v25 = vmul.f32 %v2551_v23, %v289_v24 }
 0x1ce   :  { %293 = vrot.lane.b32.xlu0 %v291_v25, %s2896_s3 }
 0x240   :  { %v294_v27 = vpop.permute.xlu0 %293 }
 0x241   :  { %v296_v28 = vadd.f32 %v294_v27, %v286_v26 }
 0x243   :  { %2552 = vtanh.f32 %v296_v28 }
 0x24d   :  { %v2553_v29 = vpop.eup %2552 }
 0x24e   :  { %299 = vrot.lane.b32.xlu1 %v2553_v29, %s2895_s28 }
 0x2c0   :  { %v300_v30 = vpop.permute.xlu1 %299 }
 0x2c1   :  { %v302_v31 = vmul.f32 %v2551_v23, %v300_v30 }
 0x2c3   :  { %304 = vrot.lane.b32.xlu1 %v302_v31, %s2896_s3 }
 0x335   :  { %v305_v32 = vpop.permute.xlu1 %304 }
 0x336   :  { %308 = vst.msk [vmem:[#allocation2] sm:$0x1] %vm307_vm2, %v305_v32  ;;  %2240 = vmatmul.mubr.msk.f32.vlgmr.msra.gmra.mrb[2].mxu0 %vm205_vm3, %v305_v32 }
 0x337   :  { %2441 = vmatpush3.bf16.msra.mxu0 %v3054_v5  ;;  %2261 = vmatprep.mubr.msk.f32.mxu0 %vm2893_vm0, %v2894_v1 }
 0x338   :  { %2442 = vmatprep.subr.bf16.mxu0 %v2892_v0 }
 0x33b   :  { %2444 = vmatpush3.bf16.msra.mxu0 %v3057_v10 }
 0x33c   :  { %2451 = vmatprep.subr.bf16.mxu0 %v2892_v0 }
 0x409   :  { %v380_v34 = vpop.f32.mrb[2].mxu0 }
 0x40a   :  { %v381_v35 = vadd.f32 %v380_v34, %v310_v33  ;;  %v2241_v36 = vpop.f32.mrb[3].mxu0 }
 0x40c   :  { %2554 = vtanh.f32 %v381_v35  ;;  %v2088_v38 = vmul.f32 -1.442695, %v381_v35 }
 0x40e   :  { %2556 = vpow2.f32 %v2088_v38 }
 0x416   :  { %v2555_v37 = vpop.eup %2554 }
 0x417   :  { %393 = vrot.lane.b32.xlu0 %v2555_v37, %s2895_s28 }
 0x418   :  { %v2557_v39 = vpop.eup %2556 }
 0x419   :  { %v387_v40 = vadd.f32 1.0, %v2557_v39 }
 0x41b   :  { %2558 = vrcp.f32 %v387_v40 }
 0x425   :  { %v2559_v41 = vpop.eup %2558 }
 0x426   :  { %v391_v44 = vmul.f32 %v2559_v41, %v296_v28  ;;  %v619_v28 = vrot.slane %v3079_v14, 4 }
 0x489   :  { %v394_v42 = vpop.permute.xlu0 %393 }
 0x48a   :  { %v396_v43 = vmul.f32 %v2559_v41, %v394_v42 }
 0x48c   :  { %398 = vrot.lane.b32.xlu1 %v396_v43, %s2896_s3 }
 0x4fe   :  { %v399_v45 = vpop.permute.xlu1 %398 }
 0x4ff   :  { %v401_v46 = vadd.f32 %v399_v45, %v391_v44 }
 0x501   :  { %2560 = vtanh.f32 %v401_v46 }
 0x50b   :  { %v2561_v47 = vpop.eup %2560 }
 0x50c   :  { %404 = vrot.lane.b32.xlu0 %v2561_v47, %s2895_s28 }
 0x57e   :  { %v405_v48 = vpop.permute.xlu0 %404 }
 0x57f   :  { %v407_v49 = vmul.f32 %v2559_v41, %v405_v48 }
 0x581   :  { %409 = vrot.lane.b32.xlu1 %v407_v49, %s2896_s3 }
 0x5f3   :  { %v410_v50 = vpop.permute.xlu1 %409 }
 0x5f4   :  { %412 = vst.msk [vmem:[#allocation2 + $0x1] sm:$0x1] %vm307_vm2, %v410_v50  ;;  %2251 = vmatmul.mubr.msk.f32.vlgmr.msra.gmra.mrb[2].mxu1 %vm205_vm3, %v410_v50 }
 0x5f5   :  { %2447 = vmatpush3.bf16.msra.mxu1 %v3054_v5  ;;  %2272 = vmatprep.mubr.msk.f32.mxu1 %vm2893_vm0, %v2894_v1 }
 0x5f6   :  { %2448 = vmatprep.subr.bf16.mxu1 %v2892_v0 }
 0x5f9   :  { %2450 = vmatpush3.bf16.msra.mxu1 %v3057_v10 }
 0x5fa   :  { %2457 = vmatprep.subr.bf16.mxu1 %v2892_v0 }
 0x6c7   :  { %v483_v52 = vpop.f32.mrb[2].mxu1 }
 0x6c8   :  { %v484_v53 = vadd.f32 %v483_v52, %v413_v51  ;;  %v2252_v54 = vpop.f32.mrb[3].mxu1 }
 0x6ca   :  { %2562 = vtanh.f32 %v484_v53  ;;  %v2090_v56 = vmul.f32 -1.442695, %v484_v53 }
 0x6cc   :  { %2564 = vpow2.f32 %v2090_v56 }
 0x6d4   :  { %v2563_v55 = vpop.eup %2562 }
 0x6d5   :  { %496 = vrot.lane.b32.xlu0 %v2563_v55, %s2895_s28 }
 0x6d6   :  { %v2565_v57 = vpop.eup %2564 }
 0x6d7   :  { %v490_v58 = vadd.f32 1.0, %v2565_v57 }
 0x6d9   :  { %2566 = vrcp.f32 %v490_v58 }
 0x6e3   :  { %v2567_v59 = vpop.eup %2566 }
 0x6e4   :  { %v494_v62 = vmul.f32 %v2567_v59, %v401_v46  ;;  %v722_v46 = vrot.slane %v3079_v14, 5 }
 0x747   :  { %v497_v60 = vpop.permute.xlu0 %496 }
 0x748   :  { %v499_v61 = vmul.f32 %v2567_v59, %v497_v60 }
 0x74a   :  { %501 = vrot.lane.b32.xlu1 %v499_v61, %s2896_s3 }
 0x7bc   :  { %v502_v63 = vpop.permute.xlu1 %501 }
 0x7bd   :  { %v504_v2 = vadd.f32 %v502_v63, %v494_v62  ;;  %v825_v62 = vrot.slane %v3079_v14, 6 }
 0x7bf   :  { %2568 = vtanh.f32 %v504_v2 }
 0x7c9   :  { %v2569_v3 = vpop.eup %2568 }
 0x7ca   :  { %507 = vrot.lane.b32.xlu0 %v2569_v3, %s2895_s28 }
 0x83c   :  { %v508_v4 = vpop.permute.xlu0 %507 }
 0x83d   :  { %v510_v6 = vmul.f32 %v2567_v59, %v508_v4 }
 0x83f   :  { %512 = vrot.lane.b32.xlu1 %v510_v6, %s2896_s3 }
 0x8b1   :  { %v513_v7 = vpop.permute.xlu1 %512 }
 0x8b2   :  { %515 = vst.msk [vmem:[#allocation2 + $0x2] sm:$0x1] %vm307_vm2, %v513_v7  ;;  %2262 = vmatmul.mubr.msk.f32.vlgmr.msra.gmra.mrb[4].mxu0 %vm205_vm3, %v513_v7 }
 0x8b3   :  { %2453 = vmatpush3.bf16.msra.mxu0 %v3054_v5  ;;  %2283 = vmatprep.mubr.msk.f32.mxu0 %vm2893_vm0, %v2894_v1 }
 0x8b4   :  { %2454 = vmatprep.subr.bf16.mxu0 %v2892_v0 }
 0x8b7   :  { %2456 = vmatpush3.bf16.msra.mxu0 %v3057_v10 }
 0x8b8   :  { %2463 = vmatprep.subr.bf16.mxu0 %v2892_v0 }
 0x985   :  { %v586_v9 = vpop.f32.mrb[4].mxu0 }
 0x986   :  { %v587_v11 = vadd.f32 %v586_v9, %v516_v8  ;;  %v2263_v12 = vpop.f32.mrb[5].mxu0 }
 0x988   :  { %2570 = vtanh.f32 %v587_v11  ;;  %v2092_v15 = vmul.f32 -1.442695, %v587_v11 }
 0x98a   :  { %2572 = vpow2.f32 %v2092_v15 }
 0x992   :  { %v2571_v13 = vpop.eup %2570 }
 0x993   :  { %599 = vrot.lane.b32.xlu0 %v2571_v13, %s2895_s28 }
 0x994   :  { %v2573_v16 = vpop.eup %2572 }
 0x995   :  { %v593_v17 = vadd.f32 1.0, %v2573_v16 }
 0x997   :  { %2574 = vrcp.f32 %v593_v17 }
 0x9a1   :  { %v2575_v18 = vpop.eup %2574 }
 0x9a2   :  { %v597_v21 = vmul.f32 %v2575_v18, %v504_v2 }
 0xa05   :  { %v600_v19 = vpop.permute.xlu0 %599 }
 0xa06   :  { %v602_v20 = vmul.f32 %v2575_v18, %v600_v19 }
 0xa08   :  { %604 = vrot.lane.b32.xlu1 %v602_v20, %s2896_s3 }
 0xa7a   :  { %v605_v22 = vpop.permute.xlu1 %604 }
 0xa7b   :  { %v607_v23 = vadd.f32 %v605_v22, %v597_v21  ;;  %v928_v21 = vrot.slane %v3079_v14, 7 }
 0xa7d   :  { %2576 = vtanh.f32 %v607_v23 }
 0xa87   :  { %v2577_v24 = vpop.eup %2576 }
 0xa88   :  { %610 = vrot.lane.b32.xlu0 %v2577_v24, %s2895_s28 }
 0xafa   :  { %v611_v25 = vpop.permute.xlu0 %610 }
 0xafb   :  { %v613_v26 = vmul.f32 %v2575_v18, %v611_v25 }
 0xafd   :  { %615 = vrot.lane.b32.xlu1 %v613_v26, %s2896_s3 }
 0xb6f   :  { %v616_v27 = vpop.permute.xlu1 %615 }
 0xb70   :  { %618 = vst.msk [vmem:[#allocation2 + $0x3] sm:$0x1] %vm307_vm2, %v616_v27  ;;  %2273 = vmatmul.mubr.msk.f32.vlgmr.msra.gmra.mrb[4].mxu1 %vm205_vm3, %v616_v27 }
 0xb71   :  { %2459 = vmatpush3.bf16.msra.mxu1 %v3054_v5  ;;  %2294 = vmatprep.mubr.msk.f32.mxu1 %vm2893_vm0, %v2894_v1 }
 0xb72   :  { %2460 = vmatprep.subr.bf16.mxu1 %v2892_v0 }
 0xb75   :  { %2462 = vmatpush3.bf16.msra.mxu1 %v3057_v10 }
 0xb76   :  { %2469 = vmatprep.subr.bf16.mxu1 %v2892_v0 }
 0xc43   :  { %v689_v29 = vpop.f32.mrb[4].mxu1 }
 0xc44   :  { %v690_v30 = vadd.f32 %v689_v29, %v619_v28  ;;  %v2274_v31 = vpop.f32.mrb[5].mxu1 }
 0xc46   :  { %2578 = vtanh.f32 %v690_v30  ;;  %v2094_v33 = vmul.f32 -1.442695, %v690_v30 }
 0xc48   :  { %2580 = vpow2.f32 %v2094_v33 }
 0xc50   :  { %v2579_v32 = vpop.eup %2578 }
 0xc51   :  { %702 = vrot.lane.b32.xlu0 %v2579_v32, %s2895_s28 }
 0xc52   :  { %v2581_v34 = vpop.eup %2580 }
 0xc53   :  { %v696_v35 = vadd.f32 1.0, %v2581_v34 }
 0xc55   :  { %2582 = vrcp.f32 %v696_v35  ;;  %v1037_v35 = vld [vmem:[#allocation9] sm:$0xff] }
 0xc5f   :  { %v2583_v36 = vpop.eup %2582 }
 0xc60   :  { %v700_v39 = vmul.f32 %v2583_v36, %v607_v23 }
 0xcc3   :  { %v703_v37 = vpop.permute.xlu0 %702 }
 0xcc4   :  { %v705_v38 = vmul.f32 %v2583_v36, %v703_v37 }
 0xcc6   :  { %707 = vrot.lane.b32.xlu1 %v705_v38, %s2896_s3  ;;  %v1041_v38 = vld [vmem:[#allocation11] sm:$0xff] }
 0xd38   :  { %v708_v40 = vpop.permute.xlu1 %707 }
 0xd39   :  { %v710_v41 = vadd.f32 %v708_v40, %v700_v39  ;;  %v1042_v39 = vld [vmem:[#allocation11 + $0x8] sm:$0xff] }
 0xd3a   :  { %v3171_v40 = vpack.c.bf16 %v1042_v39, %v1041_v38 }
 0xd3b   :  { %2584 = vtanh.f32 %v710_v41 }
 0xd45   :  { %v2585_v42 = vpop.eup %2584 }
 0xd46   :  { %713 = vrot.lane.b32.xlu0 %v2585_v42, %s2895_s28  ;;  %v1040_v42 = vld [vmem:[#allocation9 + $0x18] sm:$0xff] }
 0xdb8   :  { %v714_v43 = vpop.permute.xlu0 %713 }
 0xdb9   :  { %v716_v44 = vmul.f32 %v2583_v36, %v714_v43  ;;  %v1038_v36 = vld [vmem:[#allocation9 + $0x8] sm:$0xff]  ;;  %v1043_v43 = vld [vmem:[#allocation11 + $0x10] sm:$0xff] }
 0xdba   :  { %v2470_v37 = vpack.c.bf16 %v1038_v36, %v1037_v35 }
 0xdbb   :  { %718 = vrot.lane.b32.xlu1 %v716_v44, %s2896_s3 }
 0xe2d   :  { %v719_v45 = vpop.permute.xlu1 %718 }
 0xe2e   :  { %721 = vst.msk [vmem:[#allocation2 + $0x4] sm:$0x1] %vm307_vm2, %v719_v45  ;;  %2284 = vmatmul.mubr.msk.f32.vlgmr.msra.gmra.mrb[6].mxu0 %vm205_vm3, %v719_v45  ;;  %v1044_v45 = vld [vmem:[#allocation11 + $0x18] sm:$0xff] }
 0xe2f   :  { %2465 = vmatpush3.bf16.msra.mxu0 %v3054_v5  ;;  %2305 = vmatprep.mubr.msk.f32.mxu0 %vm2893_vm0, %v2894_v1 }
 0xe30   :  { %2466 = vmatprep.subr.bf16.mxu0 %v2892_v0 }
 0xe33   :  { %2468 = vmatpush3.bf16.msra.mxu0 %v3057_v10 }
 0xe34   :  { %2475 = vmatprep.subr.bf16.mxu0 %v2892_v0 }
 0xf01   :  { %v792_v47 = vpop.f32.mrb[6].mxu0 }
 0xf02   :  { %v793_v48 = vadd.f32 %v792_v47, %v722_v46  ;;  %v2285_v49 = vpop.f32.mrb[7].mxu0  ;;  %v3175_v46 = vpack.c.bf16 %v1044_v45, %v1043_v43 }
 0xf04   :  { %2586 = vtanh.f32 %v793_v48  ;;  %v2096_v51 = vmul.f32 -1.442695, %v793_v48 }
 0xf06   :  { %2588 = vpow2.f32 %v2096_v51 }
 0xf0e   :  { %v2587_v50 = vpop.eup %2586 }
 0xf0f   :  { %805 = vrot.lane.b32.xlu0 %v2587_v50, %s2895_s28 }
 0xf10   :  { %v2589_v5 = vpop.eup %2588 }
 0xf11   :  { %v799_v52 = vadd.f32 1.0, %v2589_v5 }
 0xf13   :  { %2590 = vrcp.f32 %v799_v52  ;;  %v2101_v52 = vld [vmem:[%s3340_s6] ss:$0 sm:$0xff]  ;;  %s2897_s6 = smov 96  }
 0xf1d   :  { %v2591_v53 = vpop.eup %2590 }
 0xf1e   :  { %v803_v10 = vmul.f32 %v2591_v53, %v710_v41  ;;  %v1039_v41 = vld [vmem:[#allocation9 + $0x10] sm:$0xff] }
 0xf1f   :  { %v2473_v44 = vpack.c.bf16 %v1040_v42, %v1039_v41 }
 0xf81   :  { %v806_v54 = vpop.permute.xlu0 %805 }
 0xf82   :  { %v808_v55 = vmul.f32 %v2591_v53, %v806_v54 }
 0xf84   :  { %810 = vrot.lane.b32.xlu1 %v808_v55, %s2896_s3 }
 0xff6   :  { %v811_v56 = vpop.permute.xlu1 %810 }
 0xff7   :  { %v813_v57 = vadd.f32 %v811_v56, %v803_v10 }
 0xff9   :  { %2592 = vtanh.f32 %v813_v57 }
0x1003   :  { %v2593_v58 = vpop.eup %2592 }
0x1004   :  { %816 = vrot.lane.b32.xlu0 %v2593_v58, %s2895_s28 }
0x1076   :  { %v817_v59 = vpop.permute.xlu0 %816 }
0x1077   :  { %v819_v60 = vmul.f32 %v2591_v53, %v817_v59 }
0x1079   :  { %821 = vrot.lane.b32.xlu1 %v819_v60, %s2896_s3 }
0x10eb   :  { %v822_v61 = vpop.permute.xlu1 %821 }
0x10ec   :  { %824 = vst.msk [vmem:[#allocation2 + $0x5] sm:$0x1] %vm307_vm2, %v822_v61  ;;  %2295 = vmatmul.mubr.msk.f32.vlgmr.msra.gmra.mrb[6].mxu1 %vm205_vm3, %v822_v61 }
0x10ed   :  { %2316 = vmatprep.mubr.msk.f32.mxu1 %vm2893_vm0, %v2894_v1  ;;  %2471 = vmatpush3.bf16.msra.mxu1 %v2470_v37 }
0x10ee   :  { %2472 = vmatprep.subr.bf16.mxu1 %v2892_v0 }
0x10f1   :  { %2474 = vmatpush3.bf16.msra.mxu1 %v2473_v44 }
0x10f2   :  { %2481 = vmatprep.subr.bf16.mxu1 %v2892_v0 }
0x11bf   :  { %v895_v63 = vpop.f32.mrb[6].mxu1 }
0x11c0   :  { %v896_v2 = vadd.f32 %v895_v63, %v825_v62  ;;  %v2296_v3 = vpop.f32.mrb[7].mxu1 }
0x11c2   :  { %2594 = vtanh.f32 %v896_v2  ;;  %v2098_v6 = vmul.f32 -1.442695, %v896_v2 }
0x11c4   :  { %2596 = vpow2.f32 %v2098_v6 }
0x11cc   :  { %v2595_v4 = vpop.eup %2594 }
0x11cd   :  { %908 = vrot.lane.b32.xlu0 %v2595_v4, %s2895_s28 }
0x11ce   :  { %v2597_v7 = vpop.eup %2596 }
0x11cf   :  { %v902_v8 = vadd.f32 1.0, %v2597_v7 }
0x11d1   :  { %2598 = vrcp.f32 %v902_v8 }
0x11db   :  { %v2599_v9 = vpop.eup %2598 }
0x11dc   :  { %v906_v13 = vmul.f32 %v2599_v9, %v813_v57 }
0x123f   :  { %v909_v11 = vpop.permute.xlu0 %908 }
0x1240   :  { %v911_v12 = vmul.f32 %v2599_v9, %v909_v11 }
0x1242   :  { %913 = vrot.lane.b32.xlu1 %v911_v12, %s2896_s3 }
0x12b4   :  { %v914_v15 = vpop.permute.xlu1 %913 }
0x12b5   :  { %v916_v16 = vadd.f32 %v914_v15, %v906_v13 }
0x12b7   :  { %2600 = vtanh.f32 %v916_v16 }
0x12c1   :  { %v2601_v17 = vpop.eup %2600 }
0x12c2   :  { %919 = vrot.lane.b32.xlu0 %v2601_v17, %s2895_s28 }
0x1334   :  { %v920_v18 = vpop.permute.xlu0 %919 }
0x1335   :  { %v922_v19 = vmul.f32 %v2599_v9, %v920_v18 }
0x1337   :  { %924 = vrot.lane.b32.xlu1 %v922_v19, %s2896_s3 }
0x13a9   :  { %v925_v20 = vpop.permute.xlu1 %924 }
0x13aa   :  { %927 = vst.msk [vmem:[#allocation2 + $0x6] sm:$0x1] %vm307_vm2, %v925_v20  ;;  %2306 = vmatmul.mubr.msk.f32.vlgmr.msra.gmra.mrb[8].mxu0 %vm205_vm3, %v925_v20 }
0x13ab   :  { %2327 = vmatprep.mubr.msk.f32.mxu0 %vm2893_vm0, %v2894_v1  ;;  %2477 = vmatpush3.bf16.msra.mxu0 %v3171_v40 }
0x13ac   :  { %2478 = vmatprep.subr.bf16.mxu0 %v2892_v0 }
0x13af   :  { %2480 = vmatpush3.bf16.msra.mxu0 %v3175_v46 }
0x13b0   :  { %2487 = vmatprep.subr.bf16.mxu0 %v2892_v0 }
0x13b2   :  { %2328 = vmatmul.mubr.f32.vlgmr.msra.gmra.mrb[10].mxu0 %v2894_v1 }
0x13b3   :  { %2489 = vmatpush3.bf16.msra.mxu0 %v3171_v40  ;;  %2349 = vmatprep.mubr.msk.f32.mxu0 %vm2893_vm0, %v2894_v1 }
0x13b4   :  { %2490 = vmatprep.subr.bf16.mxu0 %v2892_v0 }
0x13b7   :  { %2492 = vmatpush3.bf16.msra.mxu0 %v3175_v46 }
0x13b8   :  { %2499 = vmatprep.subr.bf16.mxu0 %v2892_v0 }
0x147d   :  { %v998_v22 = vpop.f32.mrb[8].mxu0 }
0x147e   :  { %v999_v23 = vadd.f32 %v998_v22, %v928_v21  ;;  %v2307_v24 = vpop.f32.mrb[9].mxu0 }
0x1480   :  { %2602 = vtanh.f32 %v999_v23  ;;  %v2100_v26 = vmul.f32 -1.442695, %v999_v23 }
0x1482   :  { %2604 = vpow2.f32 %v2100_v26 }
0x1485   :  { %v1192_v51 = vpop.f32.mrb[10].mxu0 }
0x1486   :  { %v2329_v5 = vpop.f32.mrb[11].mxu0 }
0x148a   :  { %v2603_v25 = vpop.eup %2602 }
0x148b   :  { %1011 = vrot.lane.b32.xlu0 %v2603_v25, %s2895_s28 }
0x148c   :  { %v2605_v27 = vpop.eup %2604 }
0x148d   :  { %v1005_v28 = vadd.f32 1.0, %v2605_v27 }
0x148f   :  { %2606 = vrcp.f32 %v1005_v28 }
0x1499   :  { %v2607_v29 = vpop.eup %2606 }
0x149a   :  { %v1009_v32 = vmul.f32 %v2607_v29, %v916_v16 }
0x14fd   :  { %v1012_v30 = vpop.permute.xlu0 %1011 }
0x14fe   :  { %v1014_v31 = vmul.f32 %v2607_v29, %v1012_v30 }
0x1500   :  { %1016 = vrot.lane.b32.xlu1 %v1014_v31, %s2896_s3 }
0x1572   :  { %v1017_v33 = vpop.permute.xlu1 %1016 }
0x1573   :  { %v3167_v14 = vadd.f32 %v1017_v33, %v1009_v32 }
0x1575   :  { %2608 = vtanh.f32 %v3167_v14 }
0x157f   :  { %v2609_v34 = vpop.eup %2608 }
0x1580   :  { %1022 = vrot.lane.b32.xlu0 %v2609_v34, %s2895_s28 }
0x15f2   :  { %v1023_v47 = vpop.permute.xlu0 %1022 }
0x15f3   :  { %v1025_v48 = vmul.f32 %v2607_v29, %v1023_v47 }
0x15f5   :  { %1027 = vrot.lane.b32.xlu1 %v1025_v48, %s2896_s3 }
0x1667   :  { %v1028_v49 = vpop.permute.xlu1 %1027 }
0x1668   :  { %1030 = vst.msk [vmem:[#allocation2 + $0x7] sm:$0x1] %vm307_vm2, %v1028_v49  ;;  %1031 = vst.msk [vmem:[#allocation15] sm:$0x1] %vm307_vm2, %v1028_v49 }
0x166f   :  { %v1046_v50 = vld [vmem:[#allocation2] sm:$0xff] }
0x1670   :  { %2317 = vmatmul.mubr.msk.f32.vlgmr.msra.gmra.mrb[8].mxu1 %vm205_vm3, %v1046_v50 }
0x1671   :  { %2483 = vmatpush3.bf16.msra.mxu1 %v3171_v40  ;;  %2338 = vmatprep.mubr.msk.f32.mxu1 %vm2893_vm0, %v2894_v1 }
0x1672   :  { %2484 = vmatprep.subr.bf16.mxu1 %v2892_v0 }
0x1675   :  { %2486 = vmatpush3.bf16.msra.mxu1 %v3175_v46 }
0x1676   :  { %2493 = vmatprep.subr.bf16.mxu1 %v2892_v0 }
0x1743   :  { %v1122_v53 = vpop.f32.mrb[8].mxu1 }
0x1744   :  { %v3201_v54 = vadd.f32 %v2101_v52, %v1122_v53  ;;  %v2318_v55 = vpop.f32.mrb[9].mxu1 }
0x1746   :  { %v1193_v10 = vadd.f32 %v1192_v51, %v3201_v54  ;;  %v1226_v9 = vrot.slane %v3201_v54, 1  ;;  %v1329_v29 = vrot.slane %v3201_v54, 2  ;;  %v1432_v49 = vrot.slane %v3201_v54, 3 }
0x1748   :  { %2610 = vtanh.f32 %v1193_v10  ;;  %v2103_v57 = vmul.f32 -1.442695, %v1193_v10 }
0x174a   :  { %2612 = vpow2.f32 %v2103_v57 }
0x1752   :  { %v2611_v56 = vpop.eup %2610 }
0x1753   :  { %1205 = vrot.lane.b32.xlu0 %v2611_v56, %s2895_s28 }
0x1754   :  { %v2613_v58 = vpop.eup %2612 }
0x1755   :  { %v1199_v59 = vadd.f32 1.0, %v2613_v58 }
0x1757   :  { %2614 = vrcp.f32 %v1199_v59 }
0x1761   :  { %v2615_v60 = vpop.eup %2614 }
0x1762   :  { %v1203_v63 = vmul.f32 0.0, %v2615_v60 }
0x17c5   :  { %v1206_v61 = vpop.permute.xlu0 %1205 }
0x17c6   :  { %v1208_v62 = vmul.f32 %v2615_v60, %v1206_v61 }
0x17c8   :  { %1210 = vrot.lane.b32.xlu1 %v1208_v62, %s2896_s3 }
0x183a   :  { %v1211_v2 = vpop.permute.xlu1 %1210 }
0x183b   :  { %v1213_v3 = vadd.f32 %v1211_v2, %v1203_v63 }
0x183d   :  { %2616 = vtanh.f32 %v1213_v3 }
0x1847   :  { %v2617_v4 = vpop.eup %2616 }
0x1848   :  { %1216 = vrot.lane.b32.xlu0 %v2617_v4, %s2895_s28  ;;  %v1535_v4 = vrot.slane %v3201_v54, 4 }
0x18ba   :  { %v1217_v6 = vpop.permute.xlu0 %1216 }
0x18bb   :  { %v1219_v7 = vmul.f32 %v2615_v60, %v1217_v6 }
0x18bd   :  { %1221 = vrot.lane.b32.xlu1 %v1219_v7, %s2896_s3 }
0x192f   :  { %v1222_v8 = vpop.permute.xlu1 %1221 }
0x1930   :  { %1224 = vst.msk [vmem:[#allocation2] sm:$0x1] %vm307_vm2, %v1222_v8  ;;  %2339 = vmatmul.mubr.msk.f32.vlgmr.msra.gmra.mrb[10].mxu1 %vm205_vm3, %v1222_v8 }
0x1931   :  { %2495 = vmatpush3.bf16.msra.mxu1 %v3171_v40  ;;  %2360 = vmatprep.mubr.msk.f32.mxu1 %vm2893_vm0, %v2894_v1 }
0x1932   :  { %2496 = vmatprep.subr.bf16.mxu1 %v2892_v0 }
0x1935   :  { %2498 = vmatpush3.bf16.msra.mxu1 %v3175_v46 }
0x1936   :  { %2505 = vmatprep.subr.bf16.mxu1 %v2892_v0 }
0x1a03   :  { %v1296_v11 = vpop.f32.mrb[10].mxu1 }
0x1a04   :  { %v1297_v12 = vadd.f32 %v1296_v11, %v1226_v9  ;;  %v2340_v13 = vpop.f32.mrb[11].mxu1 }
0x1a06   :  { %2618 = vtanh.f32 %v1297_v12  ;;  %v2105_v16 = vmul.f32 -1.442695, %v1297_v12 }
0x1a08   :  { %2620 = vpow2.f32 %v2105_v16 }
0x1a10   :  { %v2619_v15 = vpop.eup %2618 }
0x1a11   :  { %1309 = vrot.lane.b32.xlu0 %v2619_v15, %s2895_s28 }
0x1a12   :  { %v2621_v17 = vpop.eup %2620 }
0x1a13   :  { %v1303_v18 = vadd.f32 1.0, %v2621_v17 }
0x1a15   :  { %2622 = vrcp.f32 %v1303_v18 }
0x1a1f   :  { %v2623_v19 = vpop.eup %2622 }
0x1a20   :  { %v1307_v22 = vmul.f32 %v2623_v19, %v1213_v3 }
0x1a83   :  { %v1310_v20 = vpop.permute.xlu0 %1309 }
0x1a84   :  { %v1312_v21 = vmul.f32 %v2623_v19, %v1310_v20 }
0x1a86   :  { %1314 = vrot.lane.b32.xlu1 %v1312_v21, %s2896_s3 }
0x1af8   :  { %v1315_v23 = vpop.permute.xlu1 %1314 }
0x1af9   :  { %v1317_v24 = vadd.f32 %v1315_v23, %v1307_v22 }
0x1afb   :  { %2624 = vtanh.f32 %v1317_v24 }
0x1b05   :  { %v2625_v25 = vpop.eup %2624 }
0x1b06   :  { %1320 = vrot.lane.b32.xlu0 %v2625_v25, %s2895_s28  ;;  %v1638_v25 = vrot.slane %v3201_v54, 5 }
0x1b78   :  { %v1321_v26 = vpop.permute.xlu0 %1320 }
0x1b79   :  { %v1323_v27 = vmul.f32 %v2623_v19, %v1321_v26 }
0x1b7b   :  { %1325 = vrot.lane.b32.xlu1 %v1323_v27, %s2896_s3 }
0x1bed   :  { %v1326_v28 = vpop.permute.xlu1 %1325 }
0x1bee   :  { %1328 = vst.msk [vmem:[#allocation2 + $0x1] sm:$0x1] %vm307_vm2, %v1326_v28  ;;  %2350 = vmatmul.mubr.msk.f32.vlgmr.msra.gmra.mrb[12].mxu0 %vm205_vm3, %v1326_v28 }
0x1bef   :  { %2501 = vmatpush3.bf16.msra.mxu0 %v3171_v40  ;;  %2371 = vmatprep.mubr.msk.f32.mxu0 %vm2893_vm0, %v2894_v1 }
0x1bf0   :  { %2502 = vmatprep.subr.bf16.mxu0 %v2892_v0 }
0x1bf3   :  { %2504 = vmatpush3.bf16.msra.mxu0 %v3175_v46 }
0x1bf4   :  { %2511 = vmatprep.subr.bf16.mxu0 %v2892_v0 }
0x1cc1   :  { %v1399_v30 = vpop.f32.mrb[12].mxu0 }
0x1cc2   :  { %v1400_v31 = vadd.f32 %v1399_v30, %v1329_v29  ;;  %v2351_v32 = vpop.f32.mrb[13].mxu0 }
0x1cc4   :  { %2626 = vtanh.f32 %v1400_v31  ;;  %v2107_v34 = vmul.f32 -1.442695, %v1400_v31 }
0x1cc6   :  { %2628 = vpow2.f32 %v2107_v34 }
0x1cce   :  { %v2627_v33 = vpop.eup %2626 }
0x1ccf   :  { %1412 = vrot.lane.b32.xlu0 %v2627_v33, %s2895_s28 }
0x1cd0   :  { %v2629_v35 = vpop.eup %2628 }
0x1cd1   :  { %v1406_v36 = vadd.f32 1.0, %v2629_v35 }
0x1cd3   :  { %2630 = vrcp.f32 %v1406_v36 }
0x1cdd   :  { %v2631_v37 = vpop.eup %2630 }
0x1cde   :  { %v1410_v41 = vmul.f32 %v2631_v37, %v1317_v24 }
0x1d41   :  { %v1413_v38 = vpop.permute.xlu0 %1412 }
0x1d42   :  { %v1415_v39 = vmul.f32 %v2631_v37, %v1413_v38 }
0x1d44   :  { %1417 = vrot.lane.b32.xlu1 %v1415_v39, %s2896_s3 }
0x1db6   :  { %v1418_v42 = vpop.permute.xlu1 %1417 }
0x1db7   :  { %v1420_v43 = vadd.f32 %v1418_v42, %v1410_v41  ;;  %v1741_v42 = vrot.slane %v3201_v54, 6 }
0x1db9   :  { %2632 = vtanh.f32 %v1420_v43 }
0x1dc3   :  { %v2633_v44 = vpop.eup %2632 }
0x1dc4   :  { %1423 = vrot.lane.b32.xlu0 %v2633_v44, %s2895_s28 }
0x1e36   :  { %v1424_v45 = vpop.permute.xlu0 %1423 }
0x1e37   :  { %v1426_v47 = vmul.f32 %v2631_v37, %v1424_v45 }
0x1e39   :  { %1428 = vrot.lane.b32.xlu1 %v1426_v47, %s2896_s3 }
0x1eab   :  { %v1429_v48 = vpop.permute.xlu1 %1428 }
0x1eac   :  { %1431 = vst.msk [vmem:[#allocation2 + $0x2] sm:$0x1] %vm307_vm2, %v1429_v48  ;;  %2361 = vmatmul.mubr.msk.f32.vlgmr.msra.gmra.mrb[12].mxu1 %vm205_vm3, %v1429_v48 }
0x1ead   :  { %2507 = vmatpush3.bf16.msra.mxu1 %v3171_v40  ;;  %2382 = vmatprep.mubr.msk.f32.mxu1 %vm2893_vm0, %v2894_v1 }
0x1eae   :  { %2508 = vmatprep.subr.bf16.mxu1 %v2892_v0 }
0x1eb1   :  { %2510 = vmatpush3.bf16.msra.mxu1 %v3175_v46 }
0x1eb2   :  { %2517 = vmatprep.subr.bf16.mxu1 %v2892_v0 }
0x1f7f   :  { %v1502_v50 = vpop.f32.mrb[12].mxu1 }
0x1f80   :  { %v1503_v51 = vadd.f32 %v1502_v50, %v1432_v49  ;;  %v2362_v5 = vpop.f32.mrb[13].mxu1 }
0x1f82   :  { %2634 = vtanh.f32 %v1503_v51  ;;  %v2109_v53 = vmul.f32 -1.442695, %v1503_v51 }
0x1f84   :  { %2636 = vpow2.f32 %v2109_v53 }
0x1f8c   :  { %v2635_v52 = vpop.eup %2634 }
0x1f8d   :  { %1515 = vrot.lane.b32.xlu0 %v2635_v52, %s2895_s28 }
0x1f8e   :  { %v2637_v55 = vpop.eup %2636 }
0x1f8f   :  { %v1509_v10 = vadd.f32 1.0, %v2637_v55 }
0x1f91   :  { %2638 = vrcp.f32 %v1509_v10 }
0x1f9b   :  { %v2639_v56 = vpop.eup %2638 }
0x1f9c   :  { %v1513_v59 = vmul.f32 %v2639_v56, %v1420_v43 }
0x1fff   :  { %v1516_v57 = vpop.permute.xlu0 %1515 }
0x2000   :  { %v1518_v58 = vmul.f32 %v2639_v56, %v1516_v57 }
0x2002   :  { %1520 = vrot.lane.b32.xlu1 %v1518_v58, %s2896_s3 }
0x2074   :  { %v1521_v60 = vpop.permute.xlu1 %1520 }
0x2075   :  { %v1523_v61 = vadd.f32 %v1521_v60, %v1513_v59  ;;  %v1844_v59 = vrot.slane %v3201_v54, 7 }
0x2077   :  { %2640 = vtanh.f32 %v1523_v61 }
0x2081   :  { %v2641_v62 = vpop.eup %2640 }
0x2082   :  { %1526 = vrot.lane.b32.xlu0 %v2641_v62, %s2895_s28 }
0x20f4   :  { %v1527_v63 = vpop.permute.xlu0 %1526 }
0x20f5   :  { %v1529_v2 = vmul.f32 %v2639_v56, %v1527_v63 }
0x20f7   :  { %1531 = vrot.lane.b32.xlu1 %v1529_v2, %s2896_s3 }
0x2169   :  { %v1532_v3 = vpop.permute.xlu1 %1531 }
0x216a   :  { %1534 = vst.msk [vmem:[#allocation2 + $0x3] sm:$0x1] %vm307_vm2, %v1532_v3  ;;  %2372 = vmatmul.mubr.msk.f32.vlgmr.msra.gmra.mrb[14].mxu0 %vm205_vm3, %v1532_v3 }
0x216b   :  { %2513 = vmatpush3.bf16.msra.mxu0 %v3171_v40  ;;  %2393 = vmatprep.mubr.msk.f32.mxu0 %vm2893_vm0, %v2894_v1 }
0x216c   :  { %2514 = vmatprep.subr.bf16.mxu0 %v2892_v0 }
0x216f   :  { %2516 = vmatpush3.bf16.msra.mxu0 %v3175_v46 }
0x2170   :  { %2523 = vmatprep.subr.bf16.mxu0 %v2892_v0 }
0x223d   :  { %v1605_v6 = vpop.f32.mrb[14].mxu0 }
0x223e   :  { %v1606_v7 = vadd.f32 %v1605_v6, %v1535_v4  ;;  %v2373_v8 = vpop.f32.mrb[15].mxu0 }
0x2240   :  { %2642 = vtanh.f32 %v1606_v7  ;;  %v2111_v11 = vmul.f32 -1.442695, %v1606_v7 }
0x2242   :  { %2644 = vpow2.f32 %v2111_v11 }
0x224a   :  { %v2643_v9 = vpop.eup %2642 }
0x224b   :  { %1618 = vrot.lane.b32.xlu0 %v2643_v9, %s2895_s28 }
0x224c   :  { %v2645_v12 = vpop.eup %2644 }
0x224d   :  { %v1612_v13 = vadd.f32 1.0, %v2645_v12 }
0x224f   :  { %2646 = vrcp.f32 %v1612_v13  ;;  %v1954_v13 = vld [vmem:[#allocation12] sm:$0xff] }
0x2259   :  { %v2647_v15 = vpop.eup %2646 }
0x225a   :  { %v1616_v18 = vmul.f32 %v2647_v15, %v1523_v61 }
0x22bd   :  { %v1619_v16 = vpop.permute.xlu0 %1618 }
0x22be   :  { %v1621_v17 = vmul.f32 %v2647_v15, %v1619_v16 }
0x22c0   :  { %1623 = vrot.lane.b32.xlu1 %v1621_v17, %s2896_s3  ;;  %v1956_v17 = vld [vmem:[#allocation12 + $0x10] sm:$0xff] }
0x2332   :  { %v1624_v19 = vpop.permute.xlu1 %1623 }
0x2333   :  { %v1626_v20 = vadd.f32 %v1624_v19, %v1616_v18  ;;  %v1957_v18 = vld [vmem:[#allocation12 + $0x18] sm:$0xff] }
0x2334   :  { %v2527_v19 = vpack.c.bf16 %v1957_v18, %v1956_v17 }
0x2335   :  { %2648 = vtanh.f32 %v1626_v20 }
0x233f   :  { %v2649_v21 = vpop.eup %2648 }
0x2340   :  { %1629 = vrot.lane.b32.xlu0 %v2649_v21, %s2895_s28 }
0x23b2   :  { %v1630_v22 = vpop.permute.xlu0 %1629 }
0x23b3   :  { %v1632_v23 = vmul.f32 %v2647_v15, %v1630_v22  ;;  %v1955_v15 = vld [vmem:[#allocation12 + $0x8] sm:$0xff] }
0x23b4   :  { %v2524_v16 = vpack.c.bf16 %v1955_v15, %v1954_v13 }
0x23b5   :  { %1634 = vrot.lane.b32.xlu1 %v1632_v23, %s2896_s3 }
0x2427   :  { %v1635_v24 = vpop.permute.xlu1 %1634 }
0x2428   :  { %1637 = vst.msk [vmem:[#allocation2 + $0x4] sm:$0x1] %vm307_vm2, %v1635_v24  ;;  %2383 = vmatmul.mubr.msk.f32.vlgmr.msra.gmra.mrb[14].mxu1 %vm205_vm3, %v1635_v24 }
0x2429   :  { %2519 = vmatpush3.bf16.msra.mxu1 %v3171_v40  ;;  %2404 = vmatprep.mubr.msk.f32.mxu1 %vm2893_vm0, %v2894_v1 }
0x242a   :  { %2520 = vmatprep.subr.bf16.mxu1 %v2892_v0 }
0x242d   :  { %2522 = vmatpush3.bf16.msra.mxu1 %v3175_v46 }
0x24fb   :  { %v1708_v26 = vpop.f32.mrb[14].mxu1 }
0x24fc   :  { %v1709_v27 = vadd.f32 %v1708_v26, %v1638_v25  ;;  %v2384_v28 = vpop.f32.mrb[15].mxu1 }
0x24fe   :  { %2650 = vtanh.f32 %v1709_v27  ;;  %v2113_v30 = vmul.f32 -1.442695, %v1709_v27 }
0x2500   :  { %2652 = vpow2.f32 %v2113_v30 }
0x2508   :  { %v2651_v29 = vpop.eup %2650 }
0x2509   :  { %1721 = vrot.lane.b32.xlu0 %v2651_v29, %s2895_s28 }
0x250a   :  { %v2653_v31 = vpop.eup %2652 }
0x250b   :  { %v1715_v40 = vadd.f32 1.0, %v2653_v31 }
0x250d   :  { %2654 = vrcp.f32 %v1715_v40 }
0x2517   :  { %v2655_v32 = vpop.eup %2654 }
0x2518   :  { %v1719_v46 = vmul.f32 %v2655_v32, %v1626_v20 }
0x257b   :  { %v1722_v33 = vpop.permute.xlu0 %1721 }
0x257c   :  { %v1724_v34 = vmul.f32 %v2655_v32, %v1722_v33 }
0x257e   :  { %1726 = vrot.lane.b32.xlu1 %v1724_v34, %s2896_s3 }
0x25f0   :  { %v1727_v35 = vpop.permute.xlu1 %1726 }
0x25f1   :  { %v1729_v36 = vadd.f32 %v1727_v35, %v1719_v46 }
0x25f3   :  { %2656 = vtanh.f32 %v1729_v36 }
0x25fd   :  { %v2657_v37 = vpop.eup %2656 }
0x25fe   :  { %1732 = vrot.lane.b32.xlu0 %v2657_v37, %s2895_s28 }
0x2670   :  { %v1733_v38 = vpop.permute.xlu0 %1732 }
0x2671   :  { %v1735_v39 = vmul.f32 %v2655_v32, %v1733_v38 }
0x2673   :  { %1737 = vrot.lane.b32.xlu1 %v1735_v39, %s2896_s3 }
0x26e5   :  { %v1738_v41 = vpop.permute.xlu1 %1737 }
0x26e6   :  { %1740 = vst.msk [vmem:[#allocation2 + $0x5] sm:$0x1] %vm307_vm2, %v1738_v41  ;;  %2394 = vmatmul.mubr.msk.f32.vlgmr.msra.gmra.mrb[16].mxu0 %vm205_vm3, %v1738_v41 }
0x26e7   :  { %2415 = vmatprep.mubr.msk.f32.mxu0 %vm2893_vm0, %v2894_v1  ;;  %2525 = vmatpush3.bf16.msra.mxu0 %v2524_v16 }
0x26e8   :  { %2526 = vmatprep.subr.bf16.mxu0 %v2892_v0 }
0x26eb   :  { %2528 = vmatpush3.bf16.msra.mxu0 %v2527_v19 }
0x27b9   :  { %v1811_v43 = vpop.f32.mrb[16].mxu0 }
0x27ba   :  { %v1812_v44 = vadd.f32 %v1811_v43, %v1741_v42  ;;  %v2395_v45 = vpop.f32.mrb[17].mxu0 }
0x27bc   :  { %2658 = vtanh.f32 %v1812_v44  ;;  %v2115_v48 = vmul.f32 -1.442695, %v1812_v44 }
0x27be   :  { %2660 = vpow2.f32 %v2115_v48 }
0x27c6   :  { %v2659_v47 = vpop.eup %2658 }
0x27c7   :  { %1824 = vrot.lane.b32.xlu0 %v2659_v47, %s2895_s28 }
0x27c8   :  { %v2661_v49 = vpop.eup %2660 }
0x27c9   :  { %v1818_v50 = vadd.f32 1.0, %v2661_v49 }
0x27cb   :  { %2662 = vrcp.f32 %v1818_v50 }
0x27d5   :  { %v2663_v51 = vpop.eup %2662 }
0x27d6   :  { %v1822_v1 = vmul.f32 %v2663_v51, %v1729_v36 }
0x2839   :  { %v1825_v5 = vpop.permute.xlu0 %1824 }
0x283a   :  { %v1827_v52 = vmul.f32 %v2663_v51, %v1825_v5 }
0x283c   :  { %1829 = vrot.lane.b32.xlu1 %v1827_v52, %s2896_s3 }
0x28ae   :  { %v1830_v53 = vpop.permute.xlu1 %1829 }
0x28af   :  { %v1832_v55 = vadd.f32 %v1830_v53, %v1822_v1 }
0x28b1   :  { %2664 = vtanh.f32 %v1832_v55 }
0x28bb   :  { %v2665_v10 = vpop.eup %2664 }
0x28bc   :  { %1835 = vrot.lane.b32.xlu0 %v2665_v10, %s2895_s28 }
0x292e   :  { %v1836_v56 = vpop.permute.xlu0 %1835 }
0x292f   :  { %v1838_v57 = vmul.f32 %v2663_v51, %v1836_v56 }
0x2931   :  { %1840 = vrot.lane.b32.xlu1 %v1838_v57, %s2896_s3 }
0x29a3   :  { %v1841_v58 = vpop.permute.xlu1 %1840 }
0x29a4   :  { %1843 = vst.msk [vmem:[#allocation2 + $0x6] sm:$0x1] %vm307_vm2, %v1841_v58  ;;  %2405 = vmatmul.mubr.msk.f32.vlgmr.msra.gmra.mrb[16].mxu1 %vm205_vm3, %v1841_v58 }
0x2a77   :  { %v1914_v60 = vpop.f32.mrb[16].mxu1 }
0x2a78   :  { %v1915_v61 = vadd.f32 %v1914_v60, %v1844_v59  ;;  %v2406_v62 = vpop.f32.mrb[17].mxu1 }
0x2a7a   :  { %2666 = vtanh.f32 %v1915_v61  ;;  %v2117_v2 = vmul.f32 -1.442695, %v1915_v61 }
0x2a7c   :  { %2668 = vpow2.f32 %v2117_v2 }
0x2a84   :  { %v2667_v63 = vpop.eup %2666 }
0x2a85   :  { %1927 = vrot.lane.b32.xlu0 %v2667_v63, %s2895_s28 }
0x2a86   :  { %v2669_v3 = vpop.eup %2668 }
0x2a87   :  { %v1921_v4 = vadd.f32 1.0, %v2669_v3 }
0x2a89   :  { %2670 = vrcp.f32 %v1921_v4 }
0x2a93   :  { %v2671_v6 = vpop.eup %2670 }
0x2a94   :  { %v1925_v9 = vmul.f32 %v2671_v6, %v1832_v55 }
0x2af7   :  { %v1928_v7 = vpop.permute.xlu0 %1927 }
0x2af8   :  { %v1930_v8 = vmul.f32 %v2671_v6, %v1928_v7 }
0x2afa   :  { %1932 = vrot.lane.b32.xlu1 %v1930_v8, %s2896_s3 }
0x2b6c   :  { %v1933_v11 = vpop.permute.xlu1 %1932 }
0x2b6d   :  { %v1935_v54 = vadd.f32 %v1933_v11, %v1925_v9 }
0x2b6f   :  { %2672 = vtanh.f32 %v1935_v54 }
0x2b79   :  { %v2673_v12 = vpop.eup %2672 }
0x2b7a   :  { %1938 = vrot.lane.b32.xlu0 %v2673_v12, %s2895_s28 }
0x2b7e   :  { %1033 = vrot.lane.b32.xlu0 %v3167_v14, %s2897_s6 }
0x2bec   :  { %v1939_v20 = vpop.permute.xlu0 %1938 }
0x2bed   :  { %v1941_v21 = vmul.f32 %v2671_v6, %v1939_v20 }
0x2bef   :  { %1943 = vrot.lane.b32.xlu1 %v1941_v21, %s2896_s3 }
0x2bf0   :  { %v1034_v22 = vpop.permute.xlu0 %1033 }
0x2bf1   :  { %1036 = vst.msk [vmem:[#allocation17] sm:$0x1] %vm307_vm2, %v1034_v22 }
0x2bf3   :  { %1949 = vrot.lane.b32.xlu1 %v1935_v54, %s2897_s6 }
0x2c61   :  { %v1944_v23 = vpop.permute.xlu1 %1943 }
0x2c62   :  { %1946 = vst.msk [vmem:[#allocation2 + $0x7] sm:$0x1] %vm307_vm2, %v1944_v23  ;;  %1947 = vst.msk [vmem:[#allocation15 + $0x1] sm:$0x1] %vm307_vm2, %v1944_v23 }
0x2c65   :  { %v1950_v14 = vpop.permute.xlu1 %1949 }
0x2c66   :  { %1952 = vst.msk [vmem:[#allocation17 + $0x1] sm:$0x1] %vm307_vm2, %v1950_v14 }
0x2c69   :  { %v1953_v0 = vld [vmem:[#allocation2] sm:$0xff] }
0x2c6a   :  { %2416 = vmatmul.mubr.msk.f32.vlgmr.msra.gmra.mrb[18].mxu0 %vm205_vm3, %v1953_v0 }
0x2c6b   :  { %2817 = shalt.err (!%p2814_p10)
}
0x2c6c   :  { %s2818_s21 = scalar_lea.hbm %s3344_s10, 32 }
0x2c6d   :  { %p2819_p11 = scmp.ne.s32.totalorder %s3344_s10, %s2818_s21  ;;  %p2822_p12 = scmp.lt.u32.totalorder %s2818_s21, %s3344_s10 }
0x2c6f   :  { %p2824_p13 = pnand %p2822_p12, %p2819_p11 }
0x2c71   :  { %2827 = shalt.err (!%p2824_p13)
}
0x2c72   :  { %2058 = dma.vmem_to_hbm [thread:$0]  %s2056_s17, 32, %s3344_s10, [#allocation16]  }
0x2c73   :  { %s2899_s25 = smov [#allocation17]  }
0x2c74   :  { %s2065_s26 = sshll.u32 %s2899_s25, 4  ;;  %s2066_s26 = int_to_ptr.vmem [resolvable:$true] %s2065_s26 }
0x2c75   :  { %s2828_s29 = scalar_lea.vmem %s2066_s26, 32  ;;  %p2833_p1 = scmp.lt.s32.totalorder %s2066_s26, %s2066_s26 }
0x2c76   :  { %p2829_p0 = scmp.ne.s32.totalorder %s2066_s26, %s2828_s29  ;;  %p2834_p2 = scmp.lt.s32.totalorder %s2828_s29, %s2828_s29 }
0x2c78   :  { %p2835_p3 = por %p2834_p2, %p2833_p1 }
0x2c7a   :  { %p2836_p4 = pnand %p2835_p3, %p2829_p0 }
0x2c7c   :  { %2839 = shalt.err (!%p2836_p4)
}
0x2c7d   :  { %s2840_s30 = scalar_lea.hbm %s3345_s11, 32 }
0x2c7e   :  { %p2841_p5 = scmp.ne.s32.totalorder %s3345_s11, %s2840_s30  ;;  %p2844_p6 = scmp.lt.u32.totalorder %s2840_s30, %s3345_s11 }
0x2c80   :  { %p2846_p7 = pnand %p2844_p6, %p2841_p5 }
0x2c82   :  { %2849 = shalt.err (!%p2846_p7)
}
0x2c83   :  { %2068 = dma.vmem_to_hbm [thread:$0]  %s2066_s26, 32, %s3345_s11, [#allocation16]   ;;  %v2118_v24 = vld [vmem:[%s3342_s8] ss:$0 sm:$0xff] }
0x2c84   :  { %s2900_s14 = smov [#allocation14]  }
0x2c85   :  { %s2045_s6 = sshll.u32 %s2900_s14, 4  ;;  %s2046_s6 = int_to_ptr.vmem [resolvable:$true] %s2045_s6 }
0x2c86   :  { %s2850_s16 = scalar_lea.vmem %s2046_s6, 128  ;;  %p2855_p9 = scmp.lt.s32.totalorder %s2046_s6, %s2046_s6 }
0x2c87   :  { %p2851_p8 = scmp.ne.s32.totalorder %s2046_s6, %s2850_s16  ;;  %p2856_p10 = scmp.lt.s32.totalorder %s2850_s16, %s2850_s16 }
0x2c89   :  { %p2857_p11 = por %p2856_p10, %p2855_p9 }
0x2c8b   :  { %p2858_p12 = pnand %p2857_p11, %p2851_p8 }
0x2d3d   :  { %v2034_v25 = vpop.f32.mrb[18].mxu0 }
0x2d3e   :  { %v2035_v26 = vadd.f32 %v2118_v24, %v2034_v25  ;;  %v2417_v27 = vpop.f32.mrb[19].mxu0 }
0x2d40   :  { %2038 = vst [vmem:[#allocation14] sm:$0xff] %v2035_v26 }
0x2d41   :  { %2861 = shalt.err (!%p2858_p12)
}
0x2d42   :  { %s2862_s4 = scalar_lea.hbm %s3343_s9, 128 }
0x2d43   :  { %p2863_p13 = scmp.ne.s32.totalorder %s3343_s9, %s2862_s4  ;;  %p2866_p0 = scmp.lt.u32.totalorder %s2862_s4, %s3343_s9 }
0x2d45   :  { %p2868_p1 = pnand %p2866_p0, %p2863_p13 }
0x2d47   :  { %2871 = shalt.err (!%p2868_p1)
}
0x2d48   :  { %2048 = dma.vmem_to_hbm [thread:$0]  %s2046_s6, 128, %s3343_s9, [#allocation5]  }
0x2d49   :  { %2880 = dma.done.wait [#allocation5], 128  }
0x2d4a   :  { %2881 = vsyncadd [#allocation5], 4294967168 }
0x2d4b   :  { %2882 = dma.done.wait [#allocation16], 64  }
0x2d4c   :  { %2883 = vsyncadd [#allocation16], 4294967232 }
0x2d4d   :  { %2078 = vsyncpa [#allocation4], 1 }
0x2d4e   :  { %2079 = vsyncpa [#allocation7], 1 }
0x2d4f   :  { %2080 = vsyncpa [#allocation10], 1 }
0x2d50   :  { %2081 = vsyncpa [#allocation13], 1 }
0x2d51   :  { %2082 = vsyncpa [#allocation5], 1 }
0x2d52   :  { %2083 = vsyncpa [#allocation16], 1 }

</bundles_post_ra>
